<compile_context>
chip_gen: v6e
topology: v6e:2x2x1
jax: 0.10.0
libtpu: 0.0.40
codegen_flags: <defaults>
</compile_context>

<pallas_src>
import functools

import numpy as np
import jax
import jax.numpy as jnp
from jax.experimental import pallas as pl
from jax.experimental.pallas import tpu as pltpu


# ----------------------------------------------------------------------------
# Fused kernel: one batch element per grid step, all stages in VMEM/vregs.
# ----------------------------------------------------------------------------
def _fused_encoder_kernel(x_ref, wt_ref, tm_ref, cb_ref, fcw_ref, fcb_ref,
                          lm_ref, o_ref, *, width):
    """conv3x3(pad=1)+bias+ReLU -> linear head(+bias) -> latent col-0 zeroing.

    x_ref  : (1, Cp, H*W)     f32   current batch element, spatial flattened
    wt_ref : (9, C_mid, Cp)   f32   conv weights per 3x3 tap (padded channels)
    tm_ref : (9, 1, H*W)      f32   per-tap validity masks (zero padding)
    cb_ref : (C_mid, 1)       f32   conv bias
    fcw_ref: (C_mid*H*W, Np)  bf16  fc weight, torch-flatten row order, padded
    fcb_ref: (1, Np)          f32   fc bias (padded)
    lm_ref : (1, Np)          f32   1s except col 0 if encode_noise_info_to_latent
    o_ref  : (1, 1, Np)       f32   output row for this batch element
    """
    hw = x_ref.shape[2]            # H*W  (lane axis, multiple of 128)
    c_mid = wt_ref.shape[1]
    n_pad = o_ref.shape[2]

    x_b = x_ref[0]                 # [Cp, H*W] f32

    # ---- conv3x3, stride 1, pad 1: 9 shift-and-accumulate taps ------------
    # Tap (i, j): out[., h*W+w] uses x[., (h+i-1)*W + (w+j-1)] where valid.
    # pltpu.roll (jnp.roll semantics) on the flattened spatial axis plus the
    # precomputed validity mask reproduces the zero padding without ever
    # materializing im2col patches.  Lane-dense [c_mid, H*W] result.
    acc = jnp.zeros((c_mid, hw), jnp.float32)
    for i in range(3):
        for j in range(3):
            t = i * 3 + j
            s = (i - 1) * width + (j - 1)                 # flat spatial shift
            if s == 0:
                shifted = x_b
            else:
                shifted = pltpu.roll(x_b, shift=(-s) % hw, axis=1)
            masked = shifted * tm_ref[t]                  # [Cp, hw] * [1, hw]
            acc = acc + jnp.dot(wt_ref[t], masked,
                                preferred_element_type=jnp.float32)
    conv = jnp.maximum(acc + cb_ref[...], 0.0)            # [c_mid, hw] f32
    conv = conv.astype(fcw_ref.dtype)                     # bf16 operand for MXU

    # ---- linear head in torch-flatten order (k = m*H*W + h*W + w) ----------
    head = jnp.zeros((1, n_pad), jnp.float32)
    for m in range(c_mid):
        head = head + jnp.dot(conv[m:m + 1, :],
                              fcw_ref[m * hw:(m + 1) * hw, :],
                              preferred_element_type=jnp.float32)
    head = (head + fcb_ref[...]) * lm_ref[...]            # bias, then col-0 zeroing
    o_ref[0] = head


def _fused_forward(xk, w_taps, tap_mask, conv_b, fc_w, fc_b, lat_mask, *, width):
    B, c_in_p, hw = xk.shape
    n_taps, c_mid, _ = w_taps.shape
    fan_in, n_pad = fc_w.shape
    return pl.pallas_call(
        functools.partial(_fused_encoder_kernel, width=width),
        out_shape=jax.ShapeDtypeStruct((B, 1, n_pad), jnp.float32),
        grid=(B,),
        in_specs=[
            pl.BlockSpec((1, c_in_p, hw), lambda b: (b, 0, 0)),        # x (per batch)
            pl.BlockSpec((n_taps, c_mid, c_in_p), lambda b: (0, 0, 0)),# conv taps
            pl.BlockSpec((n_taps, 1, hw), lambda b: (0, 0, 0)),        # tap masks
            pl.BlockSpec((c_mid, 1), lambda b: (0, 0)),                # conv bias
            pl.BlockSpec((fan_in, n_pad), lambda b: (0, 0)),           # fc weight (bf16)
            pl.BlockSpec((1, n_pad), lambda b: (0, 0)),                # fc bias
            pl.BlockSpec((1, n_pad), lambda b: (0, 0)),                # latent mask
        ],
        out_specs=pl.BlockSpec((1, 1, n_pad), lambda b: (b, 0, 0)),
        compiler_params=pltpu.CompilerParams(
            dimension_semantics=("parallel",),
            vmem_limit_bytes=32 * 1024 * 1024),
    )(xk, w_taps, tap_mask, conv_b, fc_w, fc_b, lat_mask)


# ----------------------------------------------------------------------------
# Module wrapper
# ----------------------------------------------------------------------------
class NoiseProcessorReprNetworkWrapperPallas:
    """JAX/Pallas equivalent of NoiseProcessorReprNetworkWrapper.forward.

    Encoder: Conv3x3(C_in->C_mid, pad=1) + ReLU -> Flatten(NCHW) -> Linear(->latent).
    config.encode_noise_info_to_latent == True  =>  latent[:, 0] = 0.0
    """

    def __init__(self, c_in=4, c_mid=8, h=16, w=16, latent=32,
                 encode_noise_info_to_latent=True, seed=0):
        assert (h * w) % 128 == 0, "flattened spatial size must be lane-aligned"
        assert c_mid % 8 == 0, "c_mid must be sublane-aligned"
        self.c_in, self.c_mid, self.h, self.w, self.latent = c_in, c_mid, h, w, latent
        self.encode_noise_info_to_latent = encode_noise_info_to_latent

        key = jax.random.PRNGKey(seed)
        k1, k2, k3, k4 = jax.random.split(key, 4)
        # Deterministic synthetic parameters (fan-in scaled).
        self.conv_w = (jax.random.normal(k1, (c_mid, c_in, 3, 3), jnp.float32)
                       * (1.0 / (c_in * 9) ** 0.5))
        self.conv_b = jax.random.normal(k2, (c_mid,), jnp.float32) * 0.01
        fan_in = c_mid * h * w
        self.fc_w = (jax.random.normal(k3, (fan_in, latent), jnp.float32)
                     * (1.0 / fan_in ** 0.5))
        self.fc_b = jax.random.normal(k4, (latent,), jnp.float32) * 0.01

        # Pad input channels up to a sublane multiple; padded weight columns
        # are zero, so results are unchanged.
        self.c_in_pad = ((c_in + 7) // 8) * 8
        # Conv weights per 3x3 tap: w_taps[i*3+j, m, c] = conv_w[m, c, i, j].
        w_taps = jnp.transpose(self.conv_w, (2, 3, 0, 1)).reshape(9, c_mid, c_in)
        self._w_taps = jnp.pad(w_taps, ((0, 0), (0, 0), (0, self.c_in_pad - c_in)))
        self._conv_b_col = self.conv_b.reshape(c_mid, 1)

        # Per-tap validity masks (implement the pad=1 zero border) on the
        # flattened (h*w) lane axis, precomputed host-side.
        masks = np.zeros((9, 1, h * w), np.float32)
        hh = np.arange(h)[:, None]
        ww = np.arange(w)[None, :]
        for i in range(3):
            for j in range(3):
                dh, dw = i - 1, j - 1
                valid = ((hh + dh >= 0) & (hh + dh < h) &
                         (ww + dw >= 0) & (ww + dw < w))
                masks[i * 3 + j, 0, :] = valid.reshape(-1)
        self._tap_mask = jnp.asarray(masks)

        # FC weight rows are already in torch-flatten order (m*H*W + h*W + w),
        # which is exactly how the kernel slices them -> no runtime permutation.
        # Pad output features to a multiple of 128 lanes (unmasked stores), bf16.
        self.n_pad = ((latent + 127) // 128) * 128
        fc_w_pad = jnp.zeros((fan_in, self.n_pad), jnp.float32)
        fc_w_pad = fc_w_pad.at[:, :latent].set(self.fc_w)
        self._fc_w_pad = fc_w_pad.astype(jnp.bfloat16)
        self._fc_b_row = (jnp.zeros((1, self.n_pad), jnp.float32)
                          .at[0, :latent].set(self.fc_b))

        # Latent mask implements `x_encoded[:, 0] = 0.0`.
        lm = jnp.ones((1, self.n_pad), jnp.float32)
        if encode_noise_info_to_latent:
            lm = lm.at[0, 0].set(0.0)
        self._lat_mask = lm

    # TODO(synk): forward_noised (NoiseScheduler stepping + torch-RNG-based
    # noise-strength sampling) is host-side control flow and is not part of
    # forward(); it is not implemented as a Pallas kernel.

    @functools.partial(jax.jit, static_argnums=0)
    def __call__(self, x):
        """x: [B, C_in, H, W] float32 (NCHW) -> [B, latent] float32."""
        B, C, H, W = x.shape
        assert (C, H, W) == (self.c_in, self.h, self.w)
        # Pure reshape (contiguous NCHW -> [B, C, H*W]) plus zero channel pad.
        xk = x.reshape(B, C, H * W).astype(jnp.float32)
        xk = jnp.pad(xk, ((0, 0), (0, self.c_in_pad - C), (0, 0)))
        out = _fused_forward(xk, self._w_taps, self._tap_mask, self._conv_b_col,
                             self._fc_w_pad, self._fc_b_row, self._lat_mask,
                             width=W)                      # [B, 1, n_pad] f32
        return out.reshape(B, self.n_pad)[:, :self.latent]


# ----------------------------------------------------------------------------
# Pure-JAX reference (same synthetic encoder) for correctness checking.
# ----------------------------------------------------------------------------
def _reference_forward(model, x):
    conv = jax.lax.conv_general_dilated(
        x.astype(jnp.float32), model.conv_w,
        window_strides=(1, 1), padding="SAME",
        dimension_numbers=("NCHW", "OIHW", "NCHW"),
        precision=jax.lax.Precision.HIGHEST)
    conv = jnp.maximum(conv + model.conv_b.reshape(1, -1, 1, 1), 0.0)
    flat = conv.reshape(x.shape[0], -1)                    # torch.flatten order
    out = jnp.dot(flat, model.fc_w,
                  precision=jax.lax.Precision.HIGHEST) + model.fc_b
    if model.encode_noise_info_to_latent:
        out = out.at[:, 0].set(0.0)
    return out


# ----------------------------------------------------------------------------
if __name__ == "__main__":
    key = jax.random.PRNGKey(0)
    B, C, H, W = 2, 4, 16, 16
    x = jax.random.uniform(key, (B, C, H, W), dtype=jnp.float32)

    model = NoiseProcessorReprNetworkWrapperPallas(
        c_in=C, c_mid=8, h=H, w=W, latent=32,
        encode_noise_info_to_latent=True, seed=0)

    out = jax.block_until_ready(model(x))
    ref = jax.block_until_ready(_reference_forward(model, x))

    assert out.shape == (B, 32)
    assert bool(jnp.all(out[:, 0] == 0.0))   # encode_noise_info_to_latent effect
    # bf16 head weights in the kernel vs f32 reference -> loose tolerance.
    assert bool(jnp.allclose(out, ref, atol=3e-2, rtol=3e-2)), (
        f"max abs diff {float(jnp.max(jnp.abs(out - ref)))}")
    print("KERNEL_OK")
</pallas_src>

<mosaic_0001>
module attributes {stable_mosaic.version = 11 : i64} {
  func.func @_fused_encoder_kernel(%arg0: i32, %arg1: memref<1x8x256xf32, #tpu.memory_space<vmem>>, %arg2: memref<9x8x8xf32, #tpu.memory_space<vmem>>, %arg3: memref<9x1x256xf32, #tpu.memory_space<vmem>>, %arg4: memref<8x1xf32, #tpu.memory_space<vmem>>, %arg5: memref<2048x128xbf16, #tpu.memory_space<vmem>>, %arg6: memref<1x128xf32, #tpu.memory_space<vmem>>, %arg7: memref<1x128xf32, #tpu.memory_space<vmem>>, %arg8: memref<1x1x128xf32, #tpu.memory_space<vmem>>) attributes {dimension_semantics = [#tpu.dimension_semantics<parallel>], iteration_bounds = array<i64: 2>, scalar_prefetch = 0 : i64, scratch_operands = 0 : i64, tpu.core_type = #tpu.core_type<tc>, window_params = [{transform_indices = @transform_0, window_bounds = array<i64: 1, 8, 256>}, {pipeline_mode = #tpu.pipeline_mode<synchronous>, transform_indices = @transform_1, window_bounds = array<i64: 9, 8, 8>}, {pipeline_mode = #tpu.pipeline_mode<synchronous>, transform_indices = @transform_2, window_bounds = array<i64: 9, 1, 256>}, {pipeline_mode = #tpu.pipeline_mode<synchronous>, transform_indices = @transform_3, window_bounds = array<i64: 8, 1>}, {pipeline_mode = #tpu.pipeline_mode<synchronous>, transform_indices = @transform_4, window_bounds = array<i64: 2048, 128>}, {pipeline_mode = #tpu.pipeline_mode<synchronous>, transform_indices = @transform_5, window_bounds = array<i64: 1, 128>}, {pipeline_mode = #tpu.pipeline_mode<synchronous>, transform_indices = @transform_6, window_bounds = array<i64: 1, 128>}, {transform_indices = @transform_7, window_bounds = array<i64: 1, 1, 128>}]} {
    %c0 = arith.constant 0 : index
    %c0_0 = arith.constant 0 : index
    %c0_1 = arith.constant 0 : index
    %0 = vector.load %arg1[%c0, %c0_0, %c0_1] : memref<1x8x256xf32, #tpu.memory_space<vmem>>, vector<1x8x256xf32>
    %1 = vector.shape_cast %0 : vector<1x8x256xf32> to vector<8x256xf32>
    %cst = arith.constant 0.000000e+00 : f32
    %2 = vector.broadcast %cst : f32 to vector<8x256xf32>
    %c17_i32 = arith.constant 17 : i32
    %3 = tpu.dynamic_rotate %1 by %c17_i32 dim 1 : vector<8x256xf32>, i32 -> vector<8x256xf32>
    %c0_2 = arith.constant 0 : index
    %c0_3 = arith.constant 0 : index
    %c0_4 = arith.constant 0 : index
    %4 = vector.load %arg3[%c0_2, %c0_3, %c0_4] : memref<9x1x256xf32, #tpu.memory_space<vmem>>, vector<1x1x256xf32>
    %5 = vector.shape_cast %4 : vector<1x1x256xf32> to vector<1x256xf32>
    %6 = vector.broadcast %5 : vector<1x256xf32> to vector<8x256xf32>
    %7 = arith.mulf %3, %6 : vector<8x256xf32>
    %c0_5 = arith.constant 0 : index
    %c0_6 = arith.constant 0 : index
    %c0_7 = arith.constant 0 : index
    %8 = vector.load %arg2[%c0_5, %c0_6, %c0_7] : memref<9x8x8xf32, #tpu.memory_space<vmem>>, vector<1x8x8xf32>
    %9 = vector.shape_cast %8 : vector<1x8x8xf32> to vector<8x8xf32>
    %cst_8 = arith.constant dense<0.000000e+00> : vector<8x256xf32>
    %10 = tpu.matmul %9, %7, %cst_8 {dimension_numbers = #tpu.dot_dimension_numbers<[1], [0], [0], [1], [0, 0, 1, 1], [], []>} : vector<8x8xf32>, vector<8x256xf32>, vector<8x256xf32> -> vector<8x256xf32>
    %11 = arith.addf %2, %10 : vector<8x256xf32>
    %c16_i32 = arith.constant 16 : i32
    %12 = tpu.dynamic_rotate %1 by %c16_i32 dim 1 : vector<8x256xf32>, i32 -> vector<8x256xf32>
    %c1 = arith.constant 1 : index
    %c0_9 = arith.constant 0 : index
    %c0_10 = arith.constant 0 : index
    %13 = vector.load %arg3[%c1, %c0_9, %c0_10] : memref<9x1x256xf32, #tpu.memory_space<vmem>>, vector<1x1x256xf32>
    %14 = vector.shape_cast %13 : vector<1x1x256xf32> to vector<1x256xf32>
    %15 = vector.broadcast %14 : vector<1x256xf32> to vector<8x256xf32>
    %16 = arith.mulf %12, %15 : vector<8x256xf32>
    %c1_11 = arith.constant 1 : index
    %c0_12 = arith.constant 0 : index
    %c0_13 = arith.constant 0 : index
    %17 = vector.load %arg2[%c1_11, %c0_12, %c0_13] : memref<9x8x8xf32, #tpu.memory_space<vmem>>, vector<1x8x8xf32>
    %18 = vector.shape_cast %17 : vector<1x8x8xf32> to vector<8x8xf32>
    %cst_14 = arith.constant dense<0.000000e+00> : vector<8x256xf32>
    %19 = tpu.matmul %18, %16, %cst_14 {dimension_numbers = #tpu.dot_dimension_numbers<[1], [0], [0], [1], [0, 0, 1, 1], [], []>} : vector<8x8xf32>, vector<8x256xf32>, vector<8x256xf32> -> vector<8x256xf32>
    %20 = arith.addf %11, %19 : vector<8x256xf32>
    %c15_i32 = arith.constant 15 : i32
    %21 = tpu.dynamic_rotate %1 by %c15_i32 dim 1 : vector<8x256xf32>, i32 -> vector<8x256xf32>
    %c2 = arith.constant 2 : index
    %c0_15 = arith.constant 0 : index
    %c0_16 = arith.constant 0 : index
    %22 = vector.load %arg3[%c2, %c0_15, %c0_16] : memref<9x1x256xf32, #tpu.memory_space<vmem>>, vector<1x1x256xf32>
    %23 = vector.shape_cast %22 : vector<1x1x256xf32> to vector<1x256xf32>
    %24 = vector.broadcast %23 : vector<1x256xf32> to vector<8x256xf32>
    %25 = arith.mulf %21, %24 : vector<8x256xf32>
    %c2_17 = arith.constant 2 : index
    %c0_18 = arith.constant 0 : index
    %c0_19 = arith.constant 0 : index
    %26 = vector.load %arg2[%c2_17, %c0_18, %c0_19] : memref<9x8x8xf32, #tpu.memory_space<vmem>>, vector<1x8x8xf32>
    %27 = vector.shape_cast %26 : vector<1x8x8xf32> to vector<8x8xf32>
    %cst_20 = arith.constant dense<0.000000e+00> : vector<8x256xf32>
    %28 = tpu.matmul %27, %25, %cst_20 {dimension_numbers = #tpu.dot_dimension_numbers<[1], [0], [0], [1], [0, 0, 1, 1], [], []>} : vector<8x8xf32>, vector<8x256xf32>, vector<8x256xf32> -> vector<8x256xf32>
    %29 = arith.addf %20, %28 : vector<8x256xf32>
    %c1_i32 = arith.constant 1 : i32
    %30 = tpu.dynamic_rotate %1 by %c1_i32 dim 1 : vector<8x256xf32>, i32 -> vector<8x256xf32>
    %c3 = arith.constant 3 : index
    %c0_21 = arith.constant 0 : index
    %c0_22 = arith.constant 0 : index
    %31 = vector.load %arg3[%c3, %c0_21, %c0_22] : memref<9x1x256xf32, #tpu.memory_space<vmem>>, vector<1x1x256xf32>
    %32 = vector.shape_cast %31 : vector<1x1x256xf32> to vector<1x256xf32>
    %33 = vector.broadcast %32 : vector<1x256xf32> to vector<8x256xf32>
    %34 = arith.mulf %30, %33 : vector<8x256xf32>
    %c3_23 = arith.constant 3 : index
    %c0_24 = arith.constant 0 : index
    %c0_25 = arith.constant 0 : index
    %35 = vector.load %arg2[%c3_23, %c0_24, %c0_25] : memref<9x8x8xf32, #tpu.memory_space<vmem>>, vector<1x8x8xf32>
    %36 = vector.shape_cast %35 : vector<1x8x8xf32> to vector<8x8xf32>
    %cst_26 = arith.constant dense<0.000000e+00> : vector<8x256xf32>
    %37 = tpu.matmul %36, %34, %cst_26 {dimension_numbers = #tpu.dot_dimension_numbers<[1], [0], [0], [1], [0, 0, 1, 1], [], []>} : vector<8x8xf32>, vector<8x256xf32>, vector<8x256xf32> -> vector<8x256xf32>
    %38 = arith.addf %29, %37 : vector<8x256xf32>
    %c4 = arith.constant 4 : index
    %c0_27 = arith.constant 0 : index
    %c0_28 = arith.constant 0 : index
    %39 = vector.load %arg3[%c4, %c0_27, %c0_28] : memref<9x1x256xf32, #tpu.memory_space<vmem>>, vector<1x1x256xf32>
    %40 = vector.shape_cast %39 : vector<1x1x256xf32> to vector<1x256xf32>
    %41 = vector.broadcast %40 : vector<1x256xf32> to vector<8x256xf32>
    %42 = arith.mulf %1, %41 : vector<8x256xf32>
    %c4_29 = arith.constant 4 : index
    %c0_30 = arith.constant 0 : index
    %c0_31 = arith.constant 0 : index
    %43 = vector.load %arg2[%c4_29, %c0_30, %c0_31] : memref<9x8x8xf32, #tpu.memory_space<vmem>>, vector<1x8x8xf32>
    %44 = vector.shape_cast %43 : vector<1x8x8xf32> to vector<8x8xf32>
    %cst_32 = arith.constant dense<0.000000e+00> : vector<8x256xf32>
    %45 = tpu.matmul %44, %42, %cst_32 {dimension_numbers = #tpu.dot_dimension_numbers<[1], [0], [0], [1], [0, 0, 1, 1], [], []>} : vector<8x8xf32>, vector<8x256xf32>, vector<8x256xf32> -> vector<8x256xf32>
    %46 = arith.addf %38, %45 : vector<8x256xf32>
    %c255_i32 = arith.constant 255 : i32
    %47 = tpu.dynamic_rotate %1 by %c255_i32 dim 1 : vector<8x256xf32>, i32 -> vector<8x256xf32>
    %c5 = arith.constant 5 : index
    %c0_33 = arith.constant 0 : index
    %c0_34 = arith.constant 0 : index
    %48 = vector.load %arg3[%c5, %c0_33, %c0_34] : memref<9x1x256xf32, #tpu.memory_space<vmem>>, vector<1x1x256xf32>
    %49 = vector.shape_cast %48 : vector<1x1x256xf32> to vector<1x256xf32>
    %50 = vector.broadcast %49 : vector<1x256xf32> to vector<8x256xf32>
    %51 = arith.mulf %47, %50 : vector<8x256xf32>
    %c5_35 = arith.constant 5 : index
    %c0_36 = arith.constant 0 : index
    %c0_37 = arith.constant 0 : index
    %52 = vector.load %arg2[%c5_35, %c0_36, %c0_37] : memref<9x8x8xf32, #tpu.memory_space<vmem>>, vector<1x8x8xf32>
    %53 = vector.shape_cast %52 : vector<1x8x8xf32> to vector<8x8xf32>
    %cst_38 = arith.constant dense<0.000000e+00> : vector<8x256xf32>
    %54 = tpu.matmul %53, %51, %cst_38 {dimension_numbers = #tpu.dot_dimension_numbers<[1], [0], [0], [1], [0, 0, 1, 1], [], []>} : vector<8x8xf32>, vector<8x256xf32>, vector<8x256xf32> -> vector<8x256xf32>
    %55 = arith.addf %46, %54 : vector<8x256xf32>
    %c241_i32 = arith.constant 241 : i32
    %56 = tpu.dynamic_rotate %1 by %c241_i32 dim 1 : vector<8x256xf32>, i32 -> vector<8x256xf32>
    %c6 = arith.constant 6 : index
    %c0_39 = arith.constant 0 : index
    %c0_40 = arith.constant 0 : index
    %57 = vector.load %arg3[%c6, %c0_39, %c0_40] : memref<9x1x256xf32, #tpu.memory_space<vmem>>, vector<1x1x256xf32>
    %58 = vector.shape_cast %57 : vector<1x1x256xf32> to vector<1x256xf32>
    %59 = vector.broadcast %58 : vector<1x256xf32> to vector<8x256xf32>
    %60 = arith.mulf %56, %59 : vector<8x256xf32>
    %c6_41 = arith.constant 6 : index
    %c0_42 = arith.constant 0 : index
    %c0_43 = arith.constant 0 : index
    %61 = vector.load %arg2[%c6_41, %c0_42, %c0_43] : memref<9x8x8xf32, #tpu.memory_space<vmem>>, vector<1x8x8xf32>
    %62 = vector.shape_cast %61 : vector<1x8x8xf32> to vector<8x8xf32>
    %cst_44 = arith.constant dense<0.000000e+00> : vector<8x256xf32>
    %63 = tpu.matmul %62, %60, %cst_44 {dimension_numbers = #tpu.dot_dimension_numbers<[1], [0], [0], [1], [0, 0, 1, 1], [], []>} : vector<8x8xf32>, vector<8x256xf32>, vector<8x256xf32> -> vector<8x256xf32>
    %64 = arith.addf %55, %63 : vector<8x256xf32>
    %c240_i32 = arith.constant 240 : i32
    %65 = tpu.dynamic_rotate %1 by %c240_i32 dim 1 : vector<8x256xf32>, i32 -> vector<8x256xf32>
    %c7 = arith.constant 7 : index
    %c0_45 = arith.constant 0 : index
    %c0_46 = arith.constant 0 : index
    %66 = vector.load %arg3[%c7, %c0_45, %c0_46] : memref<9x1x256xf32, #tpu.memory_space<vmem>>, vector<1x1x256xf32>
    %67 = vector.shape_cast %66 : vector<1x1x256xf32> to vector<1x256xf32>
    %68 = vector.broadcast %67 : vector<1x256xf32> to vector<8x256xf32>
    %69 = arith.mulf %65, %68 : vector<8x256xf32>
    %c7_47 = arith.constant 7 : index
    %c0_48 = arith.constant 0 : index
    %c0_49 = arith.constant 0 : index
    %70 = vector.load %arg2[%c7_47, %c0_48, %c0_49] : memref<9x8x8xf32, #tpu.memory_space<vmem>>, vector<1x8x8xf32>
    %71 = vector.shape_cast %70 : vector<1x8x8xf32> to vector<8x8xf32>
    %cst_50 = arith.constant dense<0.000000e+00> : vector<8x256xf32>
    %72 = tpu.matmul %71, %69, %cst_50 {dimension_numbers = #tpu.dot_dimension_numbers<[1], [0], [0], [1], [0, 0, 1, 1], [], []>} : vector<8x8xf32>, vector<8x256xf32>, vector<8x256xf32> -> vector<8x256xf32>
    %73 = arith.addf %64, %72 : vector<8x256xf32>
    %c239_i32 = arith.constant 239 : i32
    %74 = tpu.dynamic_rotate %1 by %c239_i32 dim 1 : vector<8x256xf32>, i32 -> vector<8x256xf32>
    %c8 = arith.constant 8 : index
    %c0_51 = arith.constant 0 : index
    %c0_52 = arith.constant 0 : index
    %75 = vector.load %arg3[%c8, %c0_51, %c0_52] : memref<9x1x256xf32, #tpu.memory_space<vmem>>, vector<1x1x256xf32>
    %76 = vector.shape_cast %75 : vector<1x1x256xf32> to vector<1x256xf32>
    %77 = vector.broadcast %76 : vector<1x256xf32> to vector<8x256xf32>
    %78 = arith.mulf %74, %77 : vector<8x256xf32>
    %c8_53 = arith.constant 8 : index
    %c0_54 = arith.constant 0 : index
    %c0_55 = arith.constant 0 : index
    %79 = vector.load %arg2[%c8_53, %c0_54, %c0_55] : memref<9x8x8xf32, #tpu.memory_space<vmem>>, vector<1x8x8xf32>
    %80 = vector.shape_cast %79 : vector<1x8x8xf32> to vector<8x8xf32>
    %cst_56 = arith.constant dense<0.000000e+00> : vector<8x256xf32>
    %81 = tpu.matmul %80, %78, %cst_56 {dimension_numbers = #tpu.dot_dimension_numbers<[1], [0], [0], [1], [0, 0, 1, 1], [], []>} : vector<8x8xf32>, vector<8x256xf32>, vector<8x256xf32> -> vector<8x256xf32>
    %82 = arith.addf %73, %81 : vector<8x256xf32>
    %c0_57 = arith.constant 0 : index
    %c0_58 = arith.constant 0 : index
    %83 = vector.load %arg4[%c0_57, %c0_58] : memref<8x1xf32, #tpu.memory_space<vmem>>, vector<8x1xf32>
    %84 = vector.broadcast %83 : vector<8x1xf32> to vector<8x256xf32>
    %85 = arith.addf %82, %84 : vector<8x256xf32>
    %cst_59 = arith.constant 0.000000e+00 : f32
    %86 = vector.broadcast %cst_59 : f32 to vector<8x256xf32>
    %87 = arith.maximumf %85, %86 : vector<8x256xf32>
    %88 = arith.truncf %87 : vector<8x256xf32> to vector<8x256xbf16>
    %cst_60 = arith.constant 0.000000e+00 : f32
    %89 = vector.broadcast %cst_60 : f32 to vector<1x128xf32>
    %90 = vector.extract_strided_slice %88 {offsets = [0, 0], sizes = [1, 256], strides = [1, 1]} : vector<8x256xbf16> to vector<1x256xbf16>
    %c0_61 = arith.constant 0 : index
    %c0_62 = arith.constant 0 : index
    %91 = vector.load %arg5[%c0_61, %c0_62] : memref<2048x128xbf16, #tpu.memory_space<vmem>>, vector<256x128xbf16>
    %cst_63 = arith.constant dense<0.000000e+00> : vector<1x128xf32>
    %92 = tpu.matmul %90, %91, %cst_63 {dimension_numbers = #tpu.dot_dimension_numbers<[1], [0], [0], [1], [0, 0, 1, 1], [], []>} : vector<1x256xbf16>, vector<256x128xbf16>, vector<1x128xf32> -> vector<1x128xf32>
    %93 = arith.addf %89, %92 : vector<1x128xf32>
    %94 = vector.extract_strided_slice %88 {offsets = [1, 0], sizes = [1, 256], strides = [1, 1]} : vector<8x256xbf16> to vector<1x256xbf16>
    %c256 = arith.constant 256 : index
    %c0_64 = arith.constant 0 : index
    %95 = vector.load %arg5[%c256, %c0_64] : memref<2048x128xbf16, #tpu.memory_space<vmem>>, vector<256x128xbf16>
    %cst_65 = arith.constant dense<0.000000e+00> : vector<1x128xf32>
    %96 = tpu.matmul %94, %95, %cst_65 {dimension_numbers = #tpu.dot_dimension_numbers<[1], [0], [0], [1], [0, 0, 1, 1], [], []>} : vector<1x256xbf16>, vector<256x128xbf16>, vector<1x128xf32> -> vector<1x128xf32>
    %97 = arith.addf %93, %96 : vector<1x128xf32>
    %98 = vector.extract_strided_slice %88 {offsets = [2, 0], sizes = [1, 256], strides = [1, 1]} : vector<8x256xbf16> to vector<1x256xbf16>
    %c512 = arith.constant 512 : index
    %c0_66 = arith.constant 0 : index
    %99 = vector.load %arg5[%c512, %c0_66] : memref<2048x128xbf16, #tpu.memory_space<vmem>>, vector<256x128xbf16>
    %cst_67 = arith.constant dense<0.000000e+00> : vector<1x128xf32>
    %100 = tpu.matmul %98, %99, %cst_67 {dimension_numbers = #tpu.dot_dimension_numbers<[1], [0], [0], [1], [0, 0, 1, 1], [], []>} : vector<1x256xbf16>, vector<256x128xbf16>, vector<1x128xf32> -> vector<1x128xf32>
    %101 = arith.addf %97, %100 : vector<1x128xf32>
    %102 = vector.extract_strided_slice %88 {offsets = [3, 0], sizes = [1, 256], strides = [1, 1]} : vector<8x256xbf16> to vector<1x256xbf16>
    %c768 = arith.constant 768 : index
    %c0_68 = arith.constant 0 : index
    %103 = vector.load %arg5[%c768, %c0_68] : memref<2048x128xbf16, #tpu.memory_space<vmem>>, vector<256x128xbf16>
    %cst_69 = arith.constant dense<0.000000e+00> : vector<1x128xf32>
    %104 = tpu.matmul %102, %103, %cst_69 {dimension_numbers = #tpu.dot_dimension_numbers<[1], [0], [0], [1], [0, 0, 1, 1], [], []>} : vector<1x256xbf16>, vector<256x128xbf16>, vector<1x128xf32> -> vector<1x128xf32>
    %105 = arith.addf %101, %104 : vector<1x128xf32>
    %106 = vector.extract_strided_slice %88 {offsets = [4, 0], sizes = [1, 256], strides = [1, 1]} : vector<8x256xbf16> to vector<1x256xbf16>
    %c1024 = arith.constant 1024 : index
    %c0_70 = arith.constant 0 : index
    %107 = vector.load %arg5[%c1024, %c0_70] : memref<2048x128xbf16, #tpu.memory_space<vmem>>, vector<256x128xbf16>
    %cst_71 = arith.constant dense<0.000000e+00> : vector<1x128xf32>
    %108 = tpu.matmul %106, %107, %cst_71 {dimension_numbers = #tpu.dot_dimension_numbers<[1], [0], [0], [1], [0, 0, 1, 1], [], []>} : vector<1x256xbf16>, vector<256x128xbf16>, vector<1x128xf32> -> vector<1x128xf32>
    %109 = arith.addf %105, %108 : vector<1x128xf32>
    %110 = vector.extract_strided_slice %88 {offsets = [5, 0], sizes = [1, 256], strides = [1, 1]} : vector<8x256xbf16> to vector<1x256xbf16>
    %c1280 = arith.constant 1280 : index
    %c0_72 = arith.constant 0 : index
    %111 = vector.load %arg5[%c1280, %c0_72] : memref<2048x128xbf16, #tpu.memory_space<vmem>>, vector<256x128xbf16>
    %cst_73 = arith.constant dense<0.000000e+00> : vector<1x128xf32>
    %112 = tpu.matmul %110, %111, %cst_73 {dimension_numbers = #tpu.dot_dimension_numbers<[1], [0], [0], [1], [0, 0, 1, 1], [], []>} : vector<1x256xbf16>, vector<256x128xbf16>, vector<1x128xf32> -> vector<1x128xf32>
    %113 = arith.addf %109, %112 : vector<1x128xf32>
    %114 = vector.extract_strided_slice %88 {offsets = [6, 0], sizes = [1, 256], strides = [1, 1]} : vector<8x256xbf16> to vector<1x256xbf16>
    %c1536 = arith.constant 1536 : index
    %c0_74 = arith.constant 0 : index
    %115 = vector.load %arg5[%c1536, %c0_74] : memref<2048x128xbf16, #tpu.memory_space<vmem>>, vector<256x128xbf16>
    %cst_75 = arith.constant dense<0.000000e+00> : vector<1x128xf32>
    %116 = tpu.matmul %114, %115, %cst_75 {dimension_numbers = #tpu.dot_dimension_numbers<[1], [0], [0], [1], [0, 0, 1, 1], [], []>} : vector<1x256xbf16>, vector<256x128xbf16>, vector<1x128xf32> -> vector<1x128xf32>
    %117 = arith.addf %113, %116 : vector<1x128xf32>
    %118 = vector.extract_strided_slice %88 {offsets = [7, 0], sizes = [1, 256], strides = [1, 1]} : vector<8x256xbf16> to vector<1x256xbf16>
    %c1792 = arith.constant 1792 : index
    %c0_76 = arith.constant 0 : index
    %119 = vector.load %arg5[%c1792, %c0_76] : memref<2048x128xbf16, #tpu.memory_space<vmem>>, vector<256x128xbf16>
    %cst_77 = arith.constant dense<0.000000e+00> : vector<1x128xf32>
    %120 = tpu.matmul %118, %119, %cst_77 {dimension_numbers = #tpu.dot_dimension_numbers<[1], [0], [0], [1], [0, 0, 1, 1], [], []>} : vector<1x256xbf16>, vector<256x128xbf16>, vector<1x128xf32> -> vector<1x128xf32>
    %121 = arith.addf %117, %120 : vector<1x128xf32>
    %c0_78 = arith.constant 0 : index
    %c0_79 = arith.constant 0 : index
    %122 = vector.load %arg6[%c0_78, %c0_79] : memref<1x128xf32, #tpu.memory_space<vmem>>, vector<1x128xf32>
    %123 = arith.addf %121, %122 : vector<1x128xf32>
    %c0_80 = arith.constant 0 : index
    %c0_81 = arith.constant 0 : index
    %124 = vector.load %arg7[%c0_80, %c0_81] : memref<1x128xf32, #tpu.memory_space<vmem>>, vector<1x128xf32>
    %125 = arith.mulf %123, %124 : vector<1x128xf32>
    %c0_82 = arith.constant 0 : index
    %c0_83 = arith.constant 0 : index
    %c0_84 = arith.constant 0 : index
    %126 = vector.load %arg8[%c0_82, %c0_83, %c0_84] : memref<1x1x128xf32, #tpu.memory_space<vmem>>, vector<1x1x128xf32>
    %127 = vector.shape_cast %126 : vector<1x1x128xf32> to vector<1x128xf32>
    %128 = vector.shape_cast %125 : vector<1x128xf32> to vector<1x1x128xf32>
    tpu.vector_store %arg8[%c0_82, %c0_83, %c0_84], %128 {strides = array<i32>} : memref<1x1x128xf32, #tpu.memory_space<vmem>>, vector<1x1x128xf32>,
    return
  }
  func.func @transform_0(%arg0: i32) -> (i32, i32, i32) {
    %c0_i32 = arith.constant 0 : i32
    %c0_i32_0 = arith.constant 0 : i32
    %c0_i32_1 = arith.constant 0 : i32
    return %arg0, %c0_i32, %c0_i32_0 : i32, i32, i32
  }
  func.func @transform_1(%arg0: i32) -> (i32, i32, i32) {
    %c0_i32 = arith.constant 0 : i32
    %c0_i32_0 = arith.constant 0 : i32
    %c0_i32_1 = arith.constant 0 : i32
    %c0_i32_2 = arith.constant 0 : i32
    return %c0_i32, %c0_i32_0, %c0_i32_1 : i32, i32, i32
  }
  func.func @transform_2(%arg0: i32) -> (i32, i32, i32) {
    %c0_i32 = arith.constant 0 : i32
    %c0_i32_0 = arith.constant 0 : i32
    %c0_i32_1 = arith.constant 0 : i32
    %c0_i32_2 = arith.constant 0 : i32
    return %c0_i32, %c0_i32_0, %c0_i32_1 : i32, i32, i32
  }
  func.func @transform_3(%arg0: i32) -> (i32, i32) {
    %c0_i32 = arith.constant 0 : i32
    %c0_i32_0 = arith.constant 0 : i32
    %c0_i32_1 = arith.constant 0 : i32
    return %c0_i32, %c0_i32_0 : i32, i32
  }
  func.func @transform_4(%arg0: i32) -> (i32, i32) {
    %c0_i32 = arith.constant 0 : i32
    %c0_i32_0 = arith.constant 0 : i32
    %c0_i32_1 = arith.constant 0 : i32
    return %c0_i32, %c0_i32_0 : i32, i32
  }
  func.func @transform_5(%arg0: i32) -> (i32, i32) {
    %c0_i32 = arith.constant 0 : i32
    %c0_i32_0 = arith.constant 0 : i32
    %c0_i32_1 = arith.constant 0 : i32
    return %c0_i32, %c0_i32_0 : i32, i32
  }
  func.func @transform_6(%arg0: i32) -> (i32, i32) {
    %c0_i32 = arith.constant 0 : i32
    %c0_i32_0 = arith.constant 0 : i32
    %c0_i32_1 = arith.constant 0 : i32
    return %c0_i32, %c0_i32_0 : i32, i32
  }
  func.func @transform_7(%arg0: i32) -> (i32, i32, i32) {
    %c0_i32 = arith.constant 0 : i32
    %c0_i32_0 = arith.constant 0 : i32
    %c0_i32_1 = arith.constant 0 : i32
    return %arg0, %c0_i32, %c0_i32_0 : i32, i32, i32
  }
}

</mosaic_0001>

<bundles_post_ra>
// kernel: a_call__.1
= control target key start
LH: loop header
LB: loop body
LE: loop exit
PB: predicated region body
PF: predicated region fallthrough
CT: control target
= control target key end

     0   :  { %12 = vsyncpa [#allocation3], 0  ;;  %s3621_s0 = inlined_call_operand.vmem [shape: f32[2,8,256], index: 0, kind: input, shape index: {}]   ;;  %s3622_s1 = inlined_call_operand.vmem [shape: f32[9,8,8], index: 1, kind: input, shape index: {}]   ;;  %s3623_s2 = inlined_call_operand.vmem [shape: f32[9,1,256], index: 2, kind: input, shape index: {}]   ;;  %s3624_s3 = inlined_call_operand.vmem [shape: f32[8,1], index: 3, kind: input, shape index: {}]   ;;  %s3625_s4 = inlined_call_operand.hbm [shape: bf16[2048,128], index: 4, kind: input, shape index: {}]   ;;  %s3626_s5 = inlined_call_operand.vmem [shape: f32[1,128], index: 5, kind: input, shape index: {}]   ;;  %s3627_s6 = inlined_call_operand.vmem [shape: f32[1,128], index: 6, kind: input, shape index: {}]   ;;  %s3628_s7 = inlined_call_operand.hbm [shape: f32[2,1,128], index: 7, kind: output, shape index: {}]  }
   0x1   :  { %13 = vsyncpa [#allocation4], 0 }
   0x2   :  { %15 = vsyncpa [#allocation4 + $0x1], 0  ;;  %s3343_s24 = smov 0   ;;  %s3345_s25 = smov 0  }
   0x3   :  { %s3347_s26 = smov 0   ;;  %s3349_s27 = smov 0  }
   0x4 LB: > { %s3364_s28 = sadd.s32 4294967295, %s3287_s27   ;;  %s2665_s29 = sadd.s32 4294967294, %s3287_s27   ;;  %s3287_s27 = sphi %s3349_s27, %s3636_s27   ;;  %s3283_s26 = sphi %s3347_s26, %s3635_s26   ;;  %s3279_s25 = sphi %s3345_s25, %s3634_s25   ;;  %s3275_s24 = sphi %s3343_s24, %s3633_s24  }
   0x5   : > { %s3368_s30 = sadd.s32 1, %s3287_s27   ;;  %s180_s8 = sadd.s32 1, %s3283_s26 }
   0x6   : > { %s177_s9 = ssub.s32 %s3287_s27, %s3368_s30  ;;  %p190_p0 = scmp.ne.s32.totalorder %s3283_s26, %s3279_s25 }
   0x7   : > { %p178_p1 = scmp.eq.s32.totalorder %s177_s9, 0  ;;  %p191_p2 = scmp.eq.s32.totalorder %s3364_s28, 1 }
   0x8   : > { %p196_p3 = scmp.ne.s32.totalorder %s3279_s25, %s3275_s24  ;;  %p197_p4 = scmp.eq.s32.totalorder %s2665_s29, 1 }
   0x9   : > { %s3379_s10 = scalar_select %p178_p1, %s3283_s26, %s180_s8  }
   0xa   : > { %p3381_p5 = por %p191_p2, %p190_p0  ;;  %p3385_p6 = por %p197_p4, %p196_p3 }
   0xb   : > { %p2666_p7 = scmp.ge.s32.totalorder %s3287_s27, 1  ;;  %p204_p8 = scmp.lt.s32.totalorder %s3287_s27, 3 }
   0xc   : > { %s3630_s12 = scalar_select %p3385_p6, 1, 0 }
   0xd   : > { %p3020_p9 = scmp.eq.s32.totalorder %s3364_s28, 0  ;;  %p3392_p10 = pnand %p2666_p7, %p204_p8 }
   0xe   : > { %s3289_s14 = smov [#allocation2]  }
   0xf   : > { %s225_s15 = sshll.u32 %s3289_s14, 4  ;;  %p3012_p11 = pneg %p3392_p10  ;;  %s226_s15 = int_to_ptr.vmem [resolvable:$true] %s225_s15 }
  0x10   : > { %s3208_s16 = scalar_lea.vmem %s226_s15, 16384  ;;  %p3216_p3 = scmp.lt.s32.totalorder %s226_s15, %s226_s15 }
  0x11   : > { %p3013_p12 = pnand %p3020_p9, %p3012_p11  ;;  %p3209_p0 = scmp.ne.s32.totalorder %s226_s15, %s3208_s16 }
  0x12   : > { %p3217_p4 = scmp.lt.s32.totalorder %s3208_s16, %s3208_s16 }
  0x13   : > { %p3199_p13 = pneg %p3013_p12 }
  0x14   : > { %p3218_p6 = por %p3217_p4, %p3216_p3 }
  0x15   : > { %p3211_p1 = pnand %p3209_p0, %p3199_p13 }
  0x17   : > { %p3212_p2 = pneg %p3211_p1 }
  0x19   : > { %p3219_p7 = pnand %p3218_p6, %p3212_p2 }
  0x1b   : > { %3222 = shalt.err (!%p3219_p7)
}
  0x1c   : > { %s3290_s17 = smov 64   ;;  %s3291_s18 = smov 4  }
  0x1d   : > { %3015 = dma.hbm_to_vmem [thread:$0]  (!%p3013_p12), %s3625_s4, 16384, %s226_s15, [#allocation3], %s3290_s17, %s3290_s17, %s3291_s18  }
  0x1e   : > { %255 = sbr.rel (%p3392_p10) target bundleno = 711 (0x2c7), region = 48 }
  0x23   : > { %3266 = dma.done.wait (%p3020_p9), [#allocation3], 16384  }
  0x24   : > { %3268 = vsyncadd (%p3020_p9), [#allocation3], 4294950912  ;;  %p286_p8 = scmp.lt.s32.totalorder %s3364_s28, 1  ;;  %v3292_v0 = vmov 0.0   ;;  %s3293_s9 = smov 17   ;;  %v3299_v3 = vmov 0   ;;  %v298_v5 = vlaneseq }
  0x25   : > { %410 = vmatprep.mubr.f32.mxu0 %v3292_v0  ;;  %484 = vmatprep.mubr.f32.mxu1 %v3292_v0  ;;  %s3294_s13 = smov 16   ;;  %s3295_s14 = smov 15   ;;  %v1184_v4 = vld [vmem:[%s3624_s3] sm:$0xff]  ;;  %v2683_v15 = vld [vmem:[%s3623_s2 + $0x8] sm:$0x3]  ;;  %vm342_vm3 = vcmask 64512  }
  0x26   : > { %s287_s21 = scalar_select %p286_p8, %s3364_s28, 1  ;;  %3068 = vset.pattern.permute.xlu0 %v3299_v3  ;;  %v306_v6 = vshrl.u32 %v298_v5, 7  ;;  %v3439_v7 = vand.u32 127, %v298_v5  ;;  %v303_v10 = vld [vmem:[%s3623_s2] sm:$0x3]  ;;  %v2674_v34 = vld [vmem:[%s3622_s1 + $0x8] sm:$0xff] }
  0x27   : > { %s3296_s15 = smov 1   ;;  %s3297_s16 = smov 127   ;;  %v2673_v11 = vld [vmem:[%s3623_s2 + $0x2] sm:$0x3]  ;;  %v2677_v14 = vld [vmem:[%s3623_s2 + $0x4] sm:$0x3] }
  0x28   : > { %s2829_s22 = sshll.u32 %s287_s21, 4  ;;  %s3298_s17 = smov 113   ;;  %v3441_v8 = vsub.s32 0, %v306_v6  ;;  %v3443_v9 = vsub.s32 1, %v306_v6  ;;  %vm300_vm0 = vcmp.lt.s32.totalorder %v3439_v7, 17  ;;  %vm322_vm1 = vcmp.lt.s32.totalorder %v3439_v7, 16 }
  0x29   : > { %s290_s8 = scalar_lea.vmem %s3621_s0, %s2829_s22  ;;  %s3300_s18 = smov 112   ;;  %vm495_vm2 = vcmp.lt.s32.totalorder %v3439_v7, 15  ;;  %v2680_v29 = vld [vmem:[%s3623_s2 + $0x6] sm:$0x3]  ;;  %vm595_vm4 = vcmp.lt.s32.totalorder %v3439_v7, 1  ;;  %v2678_v47 = vld [vmem:[%s3622_s1 + $0x10] sm:$0xff] }
  0x2a   : > { %v3416_v1 = vld [vmem:[%s290_s8] sm:$0xff]  ;;  %v3420_v2 = vld [vmem:[%s290_s8 + $0x8] sm:$0xff]  ;;  %s3301_s21 = smov 111   ;;  %v312_v16 = vrot.slane %v303_v10, %v3443_v9  ;;  %v335_v17 = vrot.slane %v2673_v11, %v3443_v9  ;;  %v331_v18 = vrot.slane %v2673_v11, %v3441_v8  ;;  %v308_v19 = vrot.slane %v303_v10, %v3441_v8  ;;  %v2681_v58 = vld [vmem:[%s3622_s1 + $0x18] sm:$0xff] }
  0x2b   : > { %294 = vrot.lane.b32.xlu1 %v3416_v1, %s3293_s9  ;;  %318 = vrot.lane.b32.xlu0 %v3416_v1, %s3294_s13  ;;  %v504_v22 = vrot.slane %v2677_v14, %v3441_v8  ;;  %v508_v23 = vrot.slane %v2677_v14, %v3443_v9  ;;  %v701_v24 = vrot.slane %v2683_v15, %v3443_v9  ;;  %v317_v35 = vld [vmem:[%s3622_s1] sm:$0xff]  ;;  %v2686_v45 = vld [vmem:[%s3623_s2 + $0xa] sm:$0x3]  ;;  %vm788_vm5 = vcmp.lt.s32.totalorder %v3439_v7, 127 }
  0x2c   : > { %v697_v36 = vrot.slane %v2683_v15, %v3441_v8  ;;  %v604_v39 = vrot.slane %v2680_v29, %v3441_v8  ;;  %v608_v42 = vrot.slane %v2680_v29, %v3443_v9  ;;  %v797_v53 = vrot.slane %v2686_v45, %v3441_v8  ;;  %v2689_v57 = vld [vmem:[%s3623_s2 + $0xc] sm:$0x3]  ;;  %v2684_v59 = vld [vmem:[%s3622_s1 + $0x20] sm:$0xff]  ;;  %v2692_v5 = vld [vmem:[%s3623_s2 + $0xe] sm:$0x3] }
  0x2d   : > { %v705_v46 = vmul.f32 %v701_v24, %v3420_v2  ;;  %v801_v56 = vrot.slane %v2686_v45, %v3443_v9  ;;  %vm888_vm6 = vcmp.lt.s32.totalorder %v3439_v7, 113  ;;  %v2687_v6 = vld [vmem:[%s3622_s1 + $0x28] sm:$0xff]  ;;  %vm988_vm7 = vcmp.lt.s32.totalorder %v3439_v7, 112  ;;  %v2693_v29 = vld [vmem:[%s3622_s1 + $0x38] sm:$0xff]  ;;  %v3082_v45 = vld [vmem:[#allocation2 + $0x20] sm:$0xff]  }
  0x2e   : > { %v704_v48 = vmul.f32 %v697_v36, %v3416_v1  ;;  %vm1088_vm8 = vcmp.lt.s32.totalorder %v3439_v7, 111  ;;  %v3070_v36 = vld [vmem:[#allocation2 + $0x38] sm:$0xff]  }
  0x2f   : > { %296 = vrot.lane.b32.xlu1 %v3420_v2, %s3293_s9  ;;  %320 = vrot.lane.b32.xlu0 %v3420_v2, %s3294_s13 }
  0x33   : > { %493 = vrot.lane.b32.xlu1 %v3420_v2, %s3295_s14  ;;  %491 = vrot.lane.b32.xlu0 %v3416_v1, %s3295_s14 }
  0x37   : > { %593 = vrot.lane.b32.xlu1 %v3420_v2, %s3296_s15  ;;  %591 = vrot.lane.b32.xlu0 %v3416_v1, %s3296_s15  ;;  %s3302_s15 = smov [#allocation5]  }
  0x3b   : > { %786 = vrot.lane.b32.xlu1 %v3420_v2, %s3297_s16  ;;  %784 = vrot.lane.b32.xlu0 %v3416_v1, %s3297_s16  ;;  %s284_s16 = sand.u32 1, %s3279_s25  }
  0x3c   : > { %s285_s22 = scalar_lea.vmem [#allocation5], %s284_s16  ;;  %s2586_s13 = scalar_lea.sflag [#allocation4], %s284_s16 }
  0x3d   : > { %s2598_s23 = sshll.u32 %s285_s22, 4  ;;  %s2599_s23 = int_to_ptr.vmem [resolvable:$true] %s2598_s23 }
  0x3e   : > { %s3223_s14 = scalar_lea.vmem %s2599_s23, 16 }
  0x3f   : > { %886 = vrot.lane.b32.xlu1 %v3420_v2, %s3298_s17  ;;  %884 = vrot.lane.b32.xlu0 %v3416_v1, %s3298_s17  ;;  %p3224_p6 = scmp.ne.s32.totalorder %s2599_s23, %s3223_s14  ;;  %s3227_s17 = sshll.u32 %s3302_s15, 4  ;;  %s3228_s17 = int_to_ptr.vmem [resolvable:$false] %s3227_s17 }
  0x40   : > { %p3230_p11 = scmp.lt.s32.totalorder %s2599_s23, %s3228_s17 }
  0x41   : > { %p3225_p9 = pnand %p3224_p6, %p3381_p5 }
  0x43   : > { %986 = vrot.lane.b32.xlu1 %v3420_v2, %s3300_s18  ;;  %984 = vrot.lane.b32.xlu0 %v3416_v1, %s3300_s18  ;;  %p3226_p10 = pneg %p3225_p9 }
  0x47   : > { %1086 = vrot.lane.b32.xlu1 %v3420_v2, %s3301_s21  ;;  %1084 = vrot.lane.b32.xlu0 %v3416_v1, %s3301_s21  ;;  %v897_v1 = vrot.slane %v2689_v57, %v3441_v8  ;;  %s2826_s21 = sshll.u32 %s3364_s28, 4  ;;  %s3229_s28 = scalar_lea.vmem %s3228_s17, 32 }
  0x48   : > { %s2596_s9 = scalar_lea.hbm %s3628_s7, %s2826_s21  ;;  %p3231_p12 = scmp.lt.s32.totalorder %s3229_s28, %s3223_s14 }
  0x4a   : > { %p3232_p13 = por %p3231_p12, %p3230_p11 }
  0x4b   : > { %1187 = vperm.xlu0 %3068, %v1184_v4   ;;  %v901_v4 = vrot.slane %v2689_v57, %v3443_v9  ;;  %v3094_v57 = vld [vmem:[#allocation2 + $0x8] sm:$0xff]  }
  0x4c   : > { %p3233_p0 = pnand %p3232_p13, %p3226_p10 }
  0x9d   : > { %v295_v12 = vpop.permute.xlu1 %294  ;;  %v319_v13 = vpop.permute.xlu0 %318 }
  0xa1   : > { %v297_v20 = vpop.permute.xlu1 %296  ;;  %v321_v21 = vpop.permute.xlu0 %320 }
  0xa2   : > { %v302_v25 = vsel %vm300_vm0, %v297_v20, %v295_v12  ;;  %v324_v26 = vsel %vm322_vm1, %v321_v21, %v319_v13  ;;  %v301_v27 = vsel %vm300_vm0, %v295_v12, %v297_v20  ;;  %v323_v28 = vsel %vm322_vm1, %v319_v13, %v321_v21 }
  0xa3   : > { %v316_v30 = vmul.f32 %v312_v16, %v301_v27  ;;  %v339_v31 = vmul.f32 %v335_v17, %v323_v28  ;;  %v338_v32 = vmul.f32 %v331_v18, %v324_v26  ;;  %v315_v33 = vmul.f32 %v308_v19, %v302_v25  ;;  %v2695_v18 = vld [vmem:[%s3623_s2 + $0x10] sm:$0x3]  ;;  %v3071_v28 = vld [vmem:[#allocation2 + $0xf8] sm:$0xff]  }
  0xa4   : > { %v997_v16 = vrot.slane %v2692_v5, %v3441_v8  ;;  %v1001_v17 = vrot.slane %v2692_v5, %v3443_v9  ;;  %v2690_v19 = vld [vmem:[%s3622_s1 + $0x30] sm:$0xff]  ;;  %v1097_v26 = vrot.slane %v2695_v18, %v3441_v8  ;;  %v1101_v27 = vrot.slane %v2695_v18, %v3443_v9  ;;  %v3069_v9 = vld [vmem:[#allocation2 + $0x78] sm:$0xff]  }
  0xa5   : > { %450 = vmatprep.subr.mxu1 %v316_v30  ;;  %v494_v37 = vpop.permute.xlu1 %493  ;;  %376 = vmatprep.subr.mxu0 %v339_v31  ;;  %v492_v38 = vpop.permute.xlu0 %491  ;;  %v3072_v30 = vld [vmem:[#allocation2 + $0xb8] sm:$0xff]  }
  0xa6   : > { %v496_v40 = vsel %vm495_vm2, %v492_v38, %v494_v37  ;;  %v497_v41 = vsel %vm495_vm2, %v494_v37, %v492_v38  ;;  %377 = vmatpush1.msra.mxu0 %v338_v32  ;;  %451 = vmatpush1.msra.mxu1 %v315_v33  ;;  %v3074_v37 = vld [vmem:[#allocation2 + $0x30] sm:$0xff]  }
  0xa7   : > { %v511_v43 = vmul.f32 %v504_v22, %v497_v41  ;;  %v512_v44 = vmul.f32 %v508_v23, %v496_v40  ;;  %2675 = vmatmul.mubr.msk.f32.vlgmr.msra.gmra.mxu0 %vm342_vm3, %v2674_v34  ;;  %2676 = vmatmul.mubr.msk.f32.vlgmr.msra.gmra.mxu1 %vm342_vm3, %v317_v35  ;;  %v2696_v35 = vld [vmem:[%s3622_s1 + $0x40] sm:$0xff]  ;;  %v3075_v38 = vld [vmem:[#allocation2 + $0xf0] sm:$0xff]   ;;  %v3077_v40 = vld [vmem:[#allocation2 + $0x68] sm:$0xff]  }
  0xa8   : > { %682 = vmatprep.mubr.f32.mxu1 %v3292_v0  ;;  %582 = vmatprep.mubr.f32.mxu0 %v3292_v0  ;;  %v3078_v41 = vld [vmem:[#allocation2 + $0x28] sm:$0xff]  }
  0xa9   : > { %v594_v49 = vpop.permute.xlu1 %593  ;;  %548 = vmatprep.subr.mxu0 %v512_v44  ;;  %v592_v50 = vpop.permute.xlu0 %591  ;;  %v3081_v44 = vld [vmem:[#allocation2 + $0x60] sm:$0xff]  }
  0xaa   : > { %v596_v51 = vsel %vm595_vm4, %v592_v50, %v594_v49  ;;  %v597_v52 = vsel %vm595_vm4, %v594_v49, %v592_v50  ;;  %549 = vmatpush1.msra.mxu0 %v511_v43  ;;  %v3080_v43 = vld [vmem:[#allocation2 + $0xa8] sm:$0xff]   ;;  %v3086_v49 = vld [vmem:[#allocation2 + $0x18] sm:$0xff]  }
  0xab   : > { %v611_v54 = vmul.f32 %v604_v39, %v597_v52  ;;  %v612_v55 = vmul.f32 %v608_v42, %v596_v51  ;;  %2679 = vmatmul.mubr.msk.f32.vlgmr.msra.gmra.mxu0 %vm342_vm3, %v2678_v47  ;;  %741 = vmatprep.subr.mxu0 %v705_v46  ;;  %v3076_v39 = vld [vmem:[#allocation2 + $0xb0] sm:$0xff]   ;;  %v3079_v42 = vld [vmem:[#allocation2 + $0xe8] sm:$0xff]   ;;  %v3083_v46 = vld [vmem:[#allocation2 + $0xe0] sm:$0xff]  }
  0xac   : > { %742 = vmatpush1.msra.mxu0 %v704_v48  ;;  %775 = vmatprep.mubr.f32.mxu0 %v3292_v0  ;;  %v3084_v47 = vld [vmem:[#allocation2 + $0xa0] sm:$0xff]   ;;  %v3085_v48 = vld [vmem:[#allocation2 + $0x58] sm:$0xff]   ;;  %v3089_v52 = vld [vmem:[#allocation2 + $0x50] sm:$0xff]  }
  0xad   : > { %v787_v60 = vpop.permute.xlu1 %786  ;;  %648 = vmatprep.subr.mxu1 %v612_v55  ;;  %v785_v61 = vpop.permute.xlu0 %784  ;;  %v3087_v50 = vld [vmem:[#allocation2 + $0xd8] sm:$0xff]   ;;  %v3092_v55 = vld [vmem:[#allocation2 + $0x90] sm:$0xff]  }
  0xae   : > { %v789_v62 = vsel %vm788_vm5, %v785_v61, %v787_v60  ;;  %v790_v63 = vsel %vm788_vm5, %v787_v60, %v785_v61  ;;  %649 = vmatpush1.msra.mxu1 %v611_v54  ;;  %v3088_v51 = vld [vmem:[#allocation2 + $0x98] sm:$0xff]   ;;  %v3091_v54 = vld [vmem:[#allocation2 + $0xd0] sm:$0xff]   ;;  %v3097_v60 = vld [vmem:[#allocation2 + $0x40] sm:$0xff]  }
  0xaf   : > { %v804_v2 = vmul.f32 %v797_v53, %v789_v62  ;;  %v805_v3 = vmul.f32 %v801_v56, %v790_v63  ;;  %2682 = vmatmul.mubr.msk.f32.vlgmr.msra.gmra.mxu1 %vm342_vm3, %v2681_v58  ;;  %2685 = vmatmul.mubr.msk.f32.vlgmr.msra.gmra.mxu0 %vm342_vm3, %v2684_v59  ;;  %v3090_v53 = vld [vmem:[#allocation2 + $0x10] sm:$0xff]   ;;  %v3093_v56 = vld [vmem:[#allocation2 + $0x48] sm:$0xff]   ;;  %v3098_v61 = vld [vmem:[#allocation2] sm:$0xff]  }
  0xb0   : > { %875 = vmatprep.mubr.f32.mxu1 %v3292_v0  ;;  %975 = vmatprep.mubr.f32.mxu0 %v3292_v0  ;;  %v3095_v58 = vld [vmem:[#allocation2 + $0xc8] sm:$0xff]   ;;  %v3099_v62 = vld [vmem:[#allocation2 + $0xc0] sm:$0xff]  }
  0xb1   : > { %v887_v10 = vpop.permute.xlu1 %886  ;;  %841 = vmatprep.subr.mxu1 %v805_v3  ;;  %v885_v11 = vpop.permute.xlu0 %884  ;;  %v3096_v59 = vld [vmem:[#allocation2 + $0x88] sm:$0xff]   ;;  %v3100_v63 = vld [vmem:[#allocation2 + $0x80] sm:$0xff]  }
  0xb2   : > { %v889_v12 = vsel %vm888_vm6, %v885_v11, %v887_v10  ;;  %v890_v13 = vsel %vm888_vm6, %v887_v10, %v885_v11  ;;  %842 = vmatpush1.msra.mxu1 %v804_v2  ;;  %v3103_v2 = vld [vmem:[#allocation2 + $0x178] sm:$0xff]  }
  0xb3   : > { %v904_v14 = vmul.f32 %v897_v1, %v889_v12  ;;  %v905_v15 = vmul.f32 %v901_v4, %v890_v13  ;;  %2688 = vmatmul.mubr.msk.f32.vlgmr.msra.gmra.mxu1 %vm342_vm3, %v2687_v6  ;;  %v3101_v1 = vld [vmem:[#allocation2 + $0x1f8] sm:$0xff]  }
  0xb4   : > { %1075 = vmatprep.mubr.f32.mxu1 %v3292_v0 }
  0xb5   : > { %v987_v20 = vpop.permute.xlu1 %986  ;;  %v985_v21 = vpop.permute.xlu0 %984  ;;  %941 = vmatprep.subr.mxu0 %v905_v15 }
  0xb6   : > { %v989_v22 = vsel %vm988_vm7, %v985_v21, %v987_v20  ;;  %v990_v23 = vsel %vm988_vm7, %v987_v20, %v985_v21  ;;  %942 = vmatpush1.msra.mxu0 %v904_v14 }
  0xb7   : > { %v1004_v24 = vmul.f32 %v997_v16, %v989_v22  ;;  %v1005_v25 = vmul.f32 %v1001_v17, %v990_v23  ;;  %2691 = vmatmul.mubr.msk.f32.vlgmr.msra.gmra.mxu0 %vm342_vm3, %v2690_v19 }
  0xb8   : > { %1175 = vmatprep.mubr.f32.mxu0 %v3292_v0  ;;  %v3073_v0 = vld [vmem:[#allocation2 + $0x70] sm:$0xff]  }
  0xb9   : > { %v1087_v31 = vpop.permute.xlu1 %1086  ;;  %1041 = vmatprep.subr.mxu1 %v1005_v25  ;;  %v1085_v32 = vpop.permute.xlu0 %1084 }
  0xba   : > { %v1089_v7 = vsel %vm1088_vm8, %v1085_v32, %v1087_v31  ;;  %v1090_v33 = vsel %vm1088_vm8, %v1087_v31, %v1085_v32  ;;  %1042 = vmatpush1.msra.mxu1 %v1004_v24 }
  0xbb   : > { %v1104_v34 = vmul.f32 %v1097_v26, %v1089_v7  ;;  %v1105_v8 = vmul.f32 %v1101_v27, %v1090_v33  ;;  %2694 = vmatmul.mubr.msk.f32.vlgmr.msra.gmra.mxu1 %vm342_vm3, %v2693_v29  ;;  %2830 = vmatprep.subr.bf16.mxu1 %v3071_v28 }
  0xbc   : > { %2831 = vmatpush3.bf16.msra.mxu1 %v3072_v30 }
  0xbd   : > { %1141 = vmatprep.subr.mxu0 %v1105_v8  ;;  %2832 = vmatprep.subr.bf16.mxu1 %v3075_v38 }
  0xbe   : > { %1142 = vmatpush1.msra.mxu0 %v1104_v34 }
  0xbf   : > { %2697 = vmatmul.mubr.msk.f32.vlgmr.msra.gmra.mxu0 %vm342_vm3, %v2696_v35  ;;  %2852 = vmatprep.subr.bf16.mxu0 %v3069_v9 }
  0xc0   : > { %2853 = vmatpush3.bf16.msra.mxu0 %v3070_v36  ;;  %2833 = vmatpush3.bf16.msra.mxu1 %v3076_v39 }
  0xc1   : > { %2854 = vmatprep.subr.bf16.mxu0 %v3073_v0  ;;  %2834 = vmatprep.subr.bf16.mxu1 %v3079_v42 }
  0xc4   : > { %2855 = vmatpush3.bf16.msra.mxu0 %v3074_v37  ;;  %2835 = vmatpush3.bf16.msra.mxu1 %v3080_v43  ;;  %v3102_v43 = vld [vmem:[#allocation2 + $0x1b8] sm:$0xff]  }
  0xc5   : > { %2856 = vmatprep.subr.bf16.mxu0 %v3077_v40  ;;  %2836 = vmatprep.subr.bf16.mxu1 %v3083_v46  ;;  %v3104_v46 = vld [vmem:[#allocation2 + $0x138] sm:$0xff]  }
  0xc6   : > { %v1188_v8 = vpop.permute.xlu0 %1187 }
  0xc8   : > { %2857 = vmatpush3.bf16.msra.mxu0 %v3078_v41  ;;  %2837 = vmatpush3.bf16.msra.mxu1 %v3084_v47 }
  0xc9   : > { %2858 = vmatprep.subr.bf16.mxu0 %v3081_v44  ;;  %2838 = vmatprep.subr.bf16.mxu1 %v3087_v50  ;;  %v3105_v44 = vld [vmem:[#allocation2 + $0x1f0] sm:$0xff]  }
  0xcc   : > { %2859 = vmatpush3.bf16.msra.mxu0 %v3082_v45  ;;  %2839 = vmatpush3.bf16.msra.mxu1 %v3088_v51  ;;  %v3106_v51 = vld [vmem:[#allocation2 + $0x1b0] sm:$0xff]  }
  0xcd   : > { %2860 = vmatprep.subr.bf16.mxu0 %v3085_v48  ;;  %2840 = vmatprep.subr.bf16.mxu1 %v3091_v54  ;;  %v3107_v48 = vld [vmem:[#allocation2 + $0x170] sm:$0xff]   ;;  %v3111_v54 = vld [vmem:[#allocation2 + $0x168] sm:$0xff]  }
  0xd0   : > { %2861 = vmatpush3.bf16.msra.mxu0 %v3086_v49  ;;  %2841 = vmatpush3.bf16.msra.mxu1 %v3092_v55  ;;  %v3110_v55 = vld [vmem:[#allocation2 + $0x1a8] sm:$0xff]  }
  0xd1   : > { %2862 = vmatprep.subr.bf16.mxu0 %v3089_v52  ;;  %2842 = vmatprep.subr.bf16.mxu1 %v3095_v58  ;;  %v3109_v52 = vld [vmem:[#allocation2 + $0x1e8] sm:$0xff]   ;;  %v3115_v58 = vld [vmem:[#allocation2 + $0x160] sm:$0xff]  }
  0xd4   : > { %2863 = vmatpush3.bf16.msra.mxu0 %v3090_v53  ;;  %2843 = vmatpush3.bf16.msra.mxu1 %v3096_v59  ;;  %v3108_v53 = vld [vmem:[#allocation2 + $0x130] sm:$0xff]   ;;  %v3114_v59 = vld [vmem:[#allocation2 + $0x1a0] sm:$0xff]  }
  0xd5   : > { %2864 = vmatprep.subr.bf16.mxu0 %v3093_v56  ;;  %2844 = vmatprep.subr.bf16.mxu1 %v3099_v62  ;;  %v3113_v56 = vld [vmem:[#allocation2 + $0x1e0] sm:$0xff]   ;;  %v3119_v62 = vld [vmem:[#allocation2 + $0x158] sm:$0xff]  }
  0xd8   : > { %2865 = vmatpush3.bf16.msra.mxu0 %v3094_v57  ;;  %2845 = vmatpush3.bf16.msra.mxu1 %v3100_v63  ;;  %v3112_v57 = vld [vmem:[#allocation2 + $0x128] sm:$0xff]   ;;  %v3118_v63 = vld [vmem:[#allocation2 + $0x198] sm:$0xff]  }
  0xd9   : > { %2866 = vmatprep.subr.bf16.mxu0 %v3097_v60  ;;  %2874 = vmatprep.subr.bf16.mxu1 %v3103_v2  ;;  %v3117_v60 = vld [vmem:[#allocation2 + $0x1d8] sm:$0xff]  }
  0xda   : > { %v3120_v2 = vld [vmem:[#allocation2 + $0x118] sm:$0xff]  }
  0xdc   : > { %2867 = vmatpush3.bf16.msra.mxu0 %v3098_v61  ;;  %v3116_v61 = vld [vmem:[#allocation2 + $0x120] sm:$0xff]  }
  0xdd   : > { %2896 = vmatprep.subr.bf16.mxu0 %v3101_v1  ;;  %v3121_v1 = vld [vmem:[#allocation2 + $0x1d0] sm:$0xff]  }
 0x167   : > { %v412_v3 = vpop.f32.mrf.mxu0  ;;  %v486_v4 = vpop.f32.mrf.mxu1 }
 0x168   : > { %v487_v5 = vadd.f32 %v486_v4, %v412_v3  ;;  %v3123_v3 = vld [vmem:[#allocation2 + $0x150] sm:$0xff]  }
 0x169   : > { %v414_v6 = vpop.f32.mrf.mxu0  ;;  %v488_v10 = vpop.f32.mrf.mxu1  ;;  %v3122_v4 = vld [vmem:[#allocation2 + $0x190] sm:$0xff]  }
 0x16a   : > { %v489_v11 = vadd.f32 %v488_v10, %v414_v6  ;;  %v3124_v6 = vld [vmem:[#allocation2 + $0x110] sm:$0xff]   ;;  %v3127_v10 = vld [vmem:[#allocation2 + $0x148] sm:$0xff]  }
 0x16b   : > { %v584_v12 = vpop.f32.mrf.mxu0 }
 0x16c   : > { %v589_v13 = vadd.f32 %v584_v12, %v487_v5  ;;  %v3125_v5 = vld [vmem:[#allocation2 + $0x1c8] sm:$0xff]   ;;  %v3129_v12 = vld [vmem:[#allocation2 + $0x1c0] sm:$0xff]  }
 0x16d   : > { %v586_v14 = vpop.f32.mrf.mxu0 }
 0x16e   : > { %v590_v15 = vadd.f32 %v586_v14, %v489_v11  ;;  %v3126_v11 = vld [vmem:[#allocation2 + $0x188] sm:$0xff]   ;;  %v3131_v14 = vld [vmem:[#allocation2 + $0x140] sm:$0xff]  }
 0x16f   : > { %v684_v16 = vpop.f32.mrf.mxu1  ;;  %v777_v17 = vpop.f32.mrf.mxu0 }
 0x170   : > { %v689_v18 = vadd.f32 %v684_v16, %v589_v13  ;;  %v3128_v13 = vld [vmem:[#allocation2 + $0x108] sm:$0xff]   ;;  %v3133_v16 = vld [vmem:[#allocation2 + $0x2f8] sm:$0xff]  }
 0x171   : > { %v686_v19 = vpop.f32.mrf.mxu1  ;;  %v779_v22 = vpop.f32.mrf.mxu0 }
 0x172   : > { %v690_v20 = vadd.f32 %v686_v19, %v590_v15  ;;  %v782_v21 = vadd.f32 %v777_v17, %v689_v18  ;;  %v3130_v15 = vld [vmem:[#allocation2 + $0x180] sm:$0xff]   ;;  %v3135_v18 = vld [vmem:[#allocation2 + $0x278] sm:$0xff]  }
 0x173   : > { %v877_v23 = vpop.f32.mrf.mxu1  ;;  %v3132_v17 = vld [vmem:[#allocation2 + $0x100] sm:$0xff]   ;;  %v3134_v19 = vld [vmem:[#allocation2 + $0x2b8] sm:$0xff]  }
 0x174   : > { %v783_v24 = vadd.f32 %v779_v22, %v690_v20  ;;  %v882_v25 = vadd.f32 %v877_v23, %v782_v21  ;;  %v3137_v21 = vld [vmem:[#allocation2 + $0x2f0] sm:$0xff]   ;;  %v3136_v23 = vld [vmem:[#allocation2 + $0x238] sm:$0xff]  }
 0x175   : > { %v879_v26 = vpop.f32.mrf.mxu1 }
 0x176   : > { %v883_v28 = vadd.f32 %v879_v26, %v783_v24 }
 0x177   : > { %v977_v27 = vpop.f32.mrf.mxu0 }
 0x178   : > { %v982_v29 = vadd.f32 %v977_v27, %v882_v25  ;;  %v3139_v25 = vld [vmem:[#allocation2 + $0x270] sm:$0xff]  }
 0x179   : > { %v979_v30 = vpop.f32.mrf.mxu0  ;;  %v3138_v27 = vld [vmem:[#allocation2 + $0x2b0] sm:$0xff]  }
 0x17a   : > { %v983_v7 = vadd.f32 %v979_v30, %v883_v28  ;;  %v3141_v28 = vld [vmem:[#allocation2 + $0x2e8] sm:$0xff]  }
 0x17b   : > { %v1077_v31 = vpop.f32.mrf.mxu1  ;;  %v3143_v30 = vld [vmem:[#allocation2 + $0x268] sm:$0xff]  }
 0x17c   : > { %v1082_v33 = vadd.f32 %v1077_v31, %v982_v29  ;;  %v3140_v29 = vld [vmem:[#allocation2 + $0x230] sm:$0xff]   ;;  %v3142_v31 = vld [vmem:[#allocation2 + $0x2a8] sm:$0xff]  }
 0x17d   : > { %v1079_v32 = vpop.f32.mrf.mxu1 }
 0x17e   : > { %v1083_v9 = vadd.f32 %v1079_v32, %v983_v7  ;;  %v3145_v32 = vld [vmem:[#allocation2 + $0x2e0] sm:$0xff]   ;;  %v3144_v7 = vld [vmem:[#allocation2 + $0x228] sm:$0xff]  }
 0x17f   : > { %v1177_v34 = vpop.f32.mrf.mxu0 }
 0x180   : > { %v1182_v35 = vadd.f32 %v1177_v34, %v1082_v33  ;;  %v3147_v33 = vld [vmem:[#allocation2 + $0x260] sm:$0xff]  }
 0x181   : > { %v1179_v36 = vpop.f32.mrf.mxu0  ;;  %v3146_v34 = vld [vmem:[#allocation2 + $0x2a0] sm:$0xff]  }
 0x182   : > { %v1183_v0 = vadd.f32 %v1179_v36, %v1083_v9  ;;  %v1190_v37 = vadd.f32 %v1188_v8, %v1182_v35  ;;  %v3148_v9 = vld [vmem:[#allocation2 + $0x220] sm:$0xff]   ;;  %v3151_v35 = vld [vmem:[#allocation2 + $0x258] sm:$0xff]  }
 0x183   : > { %v3150_v36 = vld [vmem:[#allocation2 + $0x298] sm:$0xff]  }
 0x184   : > { %v1191_v38 = vadd.f32 %v1188_v8, %v1183_v0  ;;  %v1192_v39 = vmax.f32 %v1190_v37, 0.0  ;;  %v3149_v8 = vld [vmem:[#allocation2 + $0x2d8] sm:$0xff]   ;;  %v3153_v0 = vld [vmem:[#allocation2 + $0x2d0] sm:$0xff]  }
 0x185   : > { %v3152_v37 = vld [vmem:[#allocation2 + $0x218] sm:$0xff]  }
 0x186   : > { %v1193_v40 = vmax.f32 %v1191_v38, 0.0  ;;  %v3555_v41 = vpack.c.bf16 %v1192_v39, %v1192_v39  ;;  %v3155_v38 = vld [vmem:[#allocation2 + $0x250] sm:$0xff]  }
 0x187   : > { %v3154_v39 = vld [vmem:[#allocation2 + $0x290] sm:$0xff]  }
 0x188   : > { %v3557_v42 = vpack.c.bf16 %v1193_v40, %v1193_v40  ;;  %v3565_v47 = vshrl.u32 %v3555_v41, 16  ;;  %v1574_v24 = vrot.slane %v3555_v41, 1  ;;  %v3157_v40 = vld [vmem:[#allocation2 + $0x2c8] sm:$0xff]  }
 0x18a   : > { %1532 = vmatprep.mubr.bf16.mxu0 %v3557_v42  ;;  %v3561_v45 = vshrl.u32 %v3557_v42, 16  ;;  %v1575_v49 = vrot.slane %v3557_v42, 1  ;;  %v1747_v20 = vrot.slane %v3565_v47, 1  ;;  %v1921_v26 = vrot.slane %v3557_v42, 2 }
 0x18b   : > { %1533 = vmatmul.mubr.bf16.vlgmr.msra.gmra.mxu0 %v3555_v41 }
 0x18c   : > { %2897 = vmatpush3.bf16.msra.mxu0 %v3102_v43  ;;  %1396 = vmatprep.mubr.bf16.mxu1 %v3561_v45  ;;  %v1748_v50 = vrot.slane %v3561_v45, 1  ;;  %v2094_v22 = vrot.slane %v3561_v45, 2  ;;  %v3156_v43 = vld [vmem:[#allocation2 + $0x210] sm:$0xff]  }
 0x18d   : > { %1397 = vmatmul.mubr.bf16.vlgmr.msra.gmra.mxu1 %v3565_v47  ;;  %2898 = vmatprep.subr.bf16.mxu0 %v3105_v44  ;;  %v3159_v44 = vld [vmem:[#allocation2 + $0x248] sm:$0xff]  }
 0x18e   : > { %2875 = vmatpush3.bf16.msra.mxu1 %v3104_v46  ;;  %1706 = vmatprep.mubr.bf16.mxu1 %v1575_v49  ;;  %v3158_v46 = vld [vmem:[#allocation2 + $0x288] sm:$0xff]  }
 0x18f   : > { %1879 = vmatprep.mubr.bf16.mxu0 %v1748_v50  ;;  %2876 = vmatprep.subr.bf16.mxu1 %v3107_v48  ;;  %v3161_v48 = vld [vmem:[#allocation2 + $0x2c0] sm:$0xff]   ;;  %v3160_v49 = vld [vmem:[#allocation2 + $0x208] sm:$0xff]  }
 0x190   : > { %2899 = vmatpush3.bf16.msra.mxu0 %v3106_v51  ;;  %v3163_v50 = vld [vmem:[#allocation2 + $0x240] sm:$0xff]  }
 0x191   : > { %2900 = vmatprep.subr.bf16.mxu0 %v3109_v52  ;;  %v3162_v51 = vld [vmem:[#allocation2 + $0x280] sm:$0xff]   ;;  %v3165_v52 = vld [vmem:[#allocation2 + $0x3f8] sm:$0xff]  }
 0x192   : > { %2877 = vmatpush3.bf16.msra.mxu1 %v3108_v53  ;;  %v3164_v53 = vld [vmem:[#allocation2 + $0x200] sm:$0xff]  }
 0x193   : > { %2878 = vmatprep.subr.bf16.mxu1 %v3111_v54  ;;  %v3167_v54 = vld [vmem:[#allocation2 + $0x378] sm:$0xff]  }
 0x194   : > { %2901 = vmatpush3.bf16.msra.mxu0 %v3110_v55  ;;  %v3166_v55 = vld [vmem:[#allocation2 + $0x3b8] sm:$0xff]  }
 0x195   : > { %2902 = vmatprep.subr.bf16.mxu0 %v3113_v56  ;;  %v2093_v56 = vrot.slane %v3565_v47, 2 }
 0x196   : > { %2879 = vmatpush3.bf16.msra.mxu1 %v3112_v57  ;;  %v3169_v57 = vld [vmem:[#allocation2 + $0x3f0] sm:$0xff]  }
 0x197   : > { %2880 = vmatprep.subr.bf16.mxu1 %v3115_v58  ;;  %v2440_v58 = vrot.slane %v3561_v45, 3  ;;  %v3174_v45 = vld [vmem:[#allocation2 + $0x3a8] sm:$0xff]  }
 0x198   : > { %2903 = vmatpush3.bf16.msra.mxu0 %v3114_v59  ;;  %v3168_v59 = vld [vmem:[#allocation2 + $0x338] sm:$0xff]  }
 0x199   : > { %2904 = vmatprep.subr.bf16.mxu0 %v3117_v60  ;;  %v1920_v60 = vrot.slane %v3555_v41, 2 }
 0x19a   : > { %2881 = vmatpush3.bf16.msra.mxu1 %v3116_v61  ;;  %v3171_v61 = vld [vmem:[#allocation2 + $0x370] sm:$0xff]  }
 0x19b   : > { %2882 = vmatprep.subr.bf16.mxu1 %v3119_v62  ;;  %v2267_v62 = vrot.slane %v3557_v42, 3  ;;  %v3181_v42 = vld [vmem:[#allocation2 + $0x3d8] sm:$0xff]  }
 0x19c   : > { %2905 = vmatpush3.bf16.msra.mxu0 %v3118_v63  ;;  %v3170_v63 = vld [vmem:[#allocation2 + $0x3b0] sm:$0xff]  }
 0x19d   : > { %2906 = vmatprep.subr.bf16.mxu0 %v3121_v1  ;;  %v3173_v1 = vld [vmem:[#allocation2 + $0x3e8] sm:$0xff]  }
 0x19e   : > { %2883 = vmatpush3.bf16.msra.mxu1 %v3120_v2  ;;  %v3172_v2 = vld [vmem:[#allocation2 + $0x330] sm:$0xff]  }
 0x19f   : > { %2884 = vmatprep.subr.bf16.mxu1 %v3123_v3  ;;  %v3175_v3 = vld [vmem:[#allocation2 + $0x368] sm:$0xff]  }
 0x1a0   : > { %2907 = vmatpush3.bf16.msra.mxu0 %v3122_v4  ;;  %v3177_v4 = vld [vmem:[#allocation2 + $0x3e0] sm:$0xff]  }
 0x1a1   : > { %2908 = vmatprep.subr.bf16.mxu0 %v3125_v5  ;;  %v3176_v5 = vld [vmem:[#allocation2 + $0x328] sm:$0xff]  }
 0x1a2   : > { %2885 = vmatpush3.bf16.msra.mxu1 %v3124_v6  ;;  %v3179_v6 = vld [vmem:[#allocation2 + $0x360] sm:$0xff]  }
 0x1a3   : > { %2886 = vmatprep.subr.bf16.mxu1 %v3127_v10  ;;  %v3178_v10 = vld [vmem:[#allocation2 + $0x3a0] sm:$0xff]  }
 0x1a4   : > { %2909 = vmatpush3.bf16.msra.mxu0 %v3126_v11  ;;  %v3180_v11 = vld [vmem:[#allocation2 + $0x320] sm:$0xff]  }
 0x1a5   : > { %2910 = vmatprep.subr.bf16.mxu0 %v3129_v12  ;;  %v3183_v12 = vld [vmem:[#allocation2 + $0x358] sm:$0xff]  }
 0x1a6   : > { %2887 = vmatpush3.bf16.msra.mxu1 %v3128_v13  ;;  %v3182_v13 = vld [vmem:[#allocation2 + $0x398] sm:$0xff]  }
 0x1a7   : > { %2888 = vmatprep.subr.bf16.mxu1 %v3131_v14  ;;  %v3185_v14 = vld [vmem:[#allocation2 + $0x3d0] sm:$0xff]  }
 0x1a8   : > { %2911 = vmatpush3.bf16.msra.mxu0 %v3130_v15  ;;  %v3184_v15 = vld [vmem:[#allocation2 + $0x318] sm:$0xff]  }
 0x1a9   : > { %2940 = vmatprep.subr.bf16.mxu0 %v3133_v16  ;;  %v3187_v16 = vld [vmem:[#allocation2 + $0x350] sm:$0xff]  }
 0x1aa   : > { %2889 = vmatpush3.bf16.msra.mxu1 %v3132_v17  ;;  %v3186_v17 = vld [vmem:[#allocation2 + $0x390] sm:$0xff]  }
 0x1ab   : > { %1880 = vmatmul.mubr.bf16.vlgmr.msra.gmra.mxu0 %v1747_v20  ;;  %2918 = vmatprep.subr.bf16.mxu1 %v3135_v18  ;;  %v3189_v18 = vld [vmem:[#allocation2 + $0x3c8] sm:$0xff]  }
 0x1ac   : > { %2941 = vmatpush3.bf16.msra.mxu0 %v3134_v19  ;;  %2225 = vmatprep.mubr.bf16.mxu0 %v2094_v22  ;;  %v3188_v19 = vld [vmem:[#allocation2 + $0x310] sm:$0xff]   ;;  %v3191_v20 = vld [vmem:[#allocation2 + $0x348] sm:$0xff]   ;;  %v3193_v22 = vld [vmem:[#allocation2 + $0x3c0] sm:$0xff]  }
 0x1ad   : > { %1707 = vmatmul.mubr.bf16.vlgmr.msra.gmra.mxu1 %v1574_v24  ;;  %2942 = vmatprep.subr.bf16.mxu0 %v3137_v21  ;;  %v3190_v21 = vld [vmem:[#allocation2 + $0x388] sm:$0xff]   ;;  %v3195_v24 = vld [vmem:[#allocation2 + $0x340] sm:$0xff]  }
 0x1ae   : > { %2919 = vmatpush3.bf16.msra.mxu1 %v3136_v23  ;;  %2052 = vmatprep.mubr.bf16.mxu1 %v1921_v26  ;;  %v3192_v23 = vld [vmem:[#allocation2 + $0x308] sm:$0xff]   ;;  %v3196_v26 = vld [vmem:[#allocation2 + $0x300] sm:$0xff]  }
 0x1af   : > { %2920 = vmatprep.subr.bf16.mxu1 %v3139_v25  ;;  %v3194_v25 = vld [vmem:[#allocation2 + $0x380] sm:$0xff]  }
 0x1b0   : > { %2943 = vmatpush3.bf16.msra.mxu0 %v3138_v27  ;;  %v2439_v27 = vrot.slane %v3565_v47, 3 }
 0x1b1   : > { %2944 = vmatprep.subr.bf16.mxu0 %v3141_v28  ;;  %v2266_v28 = vrot.slane %v3555_v41, 3 }
 0x1b2   : > { %2921 = vmatpush3.bf16.msra.mxu1 %v3140_v29 }
 0x1b3   : > { %2922 = vmatprep.subr.bf16.mxu1 %v3143_v30 }
 0x1b4   : > { %2945 = vmatpush3.bf16.msra.mxu0 %v3142_v31 }
 0x1b5   : > { %2946 = vmatprep.subr.bf16.mxu0 %v3145_v32 }
 0x1b6   : > { %2923 = vmatpush3.bf16.msra.mxu1 %v3144_v7 }
 0x1b7   : > { %2924 = vmatprep.subr.bf16.mxu1 %v3147_v33 }
 0x1b8   : > { %2947 = vmatpush3.bf16.msra.mxu0 %v3146_v34 }
 0x1b9   : > { %2948 = vmatprep.subr.bf16.mxu0 %v3149_v8 }
 0x1ba   : > { %2925 = vmatpush3.bf16.msra.mxu1 %v3148_v9 }
 0x1bb   : > { %2926 = vmatprep.subr.bf16.mxu1 %v3151_v35 }
 0x1bc   : > { %2949 = vmatpush3.bf16.msra.mxu0 %v3150_v36 }
 0x1bd   : > { %2950 = vmatprep.subr.bf16.mxu0 %v3153_v0 }
 0x1be   : > { %2927 = vmatpush3.bf16.msra.mxu1 %v3152_v37 }
 0x1bf   : > { %2928 = vmatprep.subr.bf16.mxu1 %v3155_v38 }
 0x1c0   : > { %2951 = vmatpush3.bf16.msra.mxu0 %v3154_v39 }
 0x1c1   : > { %2952 = vmatprep.subr.bf16.mxu0 %v3157_v40 }
 0x1c2   : > { %2929 = vmatpush3.bf16.msra.mxu1 %v3156_v43 }
 0x1c3   : > { %2930 = vmatprep.subr.bf16.mxu1 %v3159_v44 }
 0x1c4   : > { %2953 = vmatpush3.bf16.msra.mxu0 %v3158_v46 }
 0x1c5   : > { %2954 = vmatprep.subr.bf16.mxu0 %v3161_v48 }
 0x1c6   : > { %2931 = vmatpush3.bf16.msra.mxu1 %v3160_v49 }
 0x1c7   : > { %2932 = vmatprep.subr.bf16.mxu1 %v3163_v50 }
 0x1c8   : > { %2955 = vmatpush3.bf16.msra.mxu0 %v3162_v51 }
 0x1c9   : > { %2984 = vmatprep.subr.bf16.mxu0 %v3165_v52 }
 0x1ca   : > { %2933 = vmatpush3.bf16.msra.mxu1 %v3164_v53 }
 0x1cb   : > { %2226 = vmatmul.mubr.bf16.vlgmr.msra.gmra.mxu0 %v2093_v56  ;;  %2962 = vmatprep.subr.bf16.mxu1 %v3167_v54 }
 0x1cc   : > { %2985 = vmatpush3.bf16.msra.mxu0 %v3166_v55  ;;  %2571 = vmatprep.mubr.bf16.mxu0 %v2440_v58 }
 0x1cd   : > { %2053 = vmatmul.mubr.bf16.vlgmr.msra.gmra.mxu1 %v1920_v60  ;;  %2986 = vmatprep.subr.bf16.mxu0 %v3169_v57 }
 0x1ce   : > { %2963 = vmatpush3.bf16.msra.mxu1 %v3168_v59  ;;  %2398 = vmatprep.mubr.bf16.mxu1 %v2267_v62 }
 0x1cf   : > { %2964 = vmatprep.subr.bf16.mxu1 %v3171_v61 }
 0x1d0   : > { %2987 = vmatpush3.bf16.msra.mxu0 %v3170_v63 }
 0x1d1   : > { %2988 = vmatprep.subr.bf16.mxu0 %v3173_v1 }
 0x1d2   : > { %2965 = vmatpush3.bf16.msra.mxu1 %v3172_v2 }
 0x1d3   : > { %2966 = vmatprep.subr.bf16.mxu1 %v3175_v3 }
 0x1d4   : > { %2989 = vmatpush3.bf16.msra.mxu0 %v3174_v45 }
 0x1d5   : > { %2990 = vmatprep.subr.bf16.mxu0 %v3177_v4 }
 0x1d6   : > { %2967 = vmatpush3.bf16.msra.mxu1 %v3176_v5 }
 0x1d7   : > { %2968 = vmatprep.subr.bf16.mxu1 %v3179_v6 }
 0x1d8   : > { %2991 = vmatpush3.bf16.msra.mxu0 %v3178_v10 }
 0x1d9   : > { %2992 = vmatprep.subr.bf16.mxu0 %v3181_v42  ;;  %v2580_v42 = vld [vmem:[%s3626_s5] sm:$0x1] }
 0x1da   : > { %2969 = vmatpush3.bf16.msra.mxu1 %v3180_v11 }
 0x1db   : > { %2970 = vmatprep.subr.bf16.mxu1 %v3183_v12 }
 0x1dc   : > { %2993 = vmatpush3.bf16.msra.mxu0 %v3182_v13  ;;  %v2582_v13 = vld [vmem:[%s3627_s6] sm:$0x1] }
 0x1dd   : > { %2994 = vmatprep.subr.bf16.mxu0 %v3185_v14 }
 0x1de   : > { %2971 = vmatpush3.bf16.msra.mxu1 %v3184_v15 }
 0x1df   : > { %2972 = vmatprep.subr.bf16.mxu1 %v3187_v16 }
 0x1e0   : > { %2995 = vmatpush3.bf16.msra.mxu0 %v3186_v17 }
 0x1e1   : > { %2996 = vmatprep.subr.bf16.mxu0 %v3189_v18 }
 0x1e2   : > { %2973 = vmatpush3.bf16.msra.mxu1 %v3188_v19 }
 0x1e3   : > { %2974 = vmatprep.subr.bf16.mxu1 %v3191_v20 }
 0x1e4   : > { %2997 = vmatpush3.bf16.msra.mxu0 %v3190_v21 }
 0x1e5   : > { %2998 = vmatprep.subr.bf16.mxu0 %v3193_v22 }
 0x1e6   : > { %2975 = vmatpush3.bf16.msra.mxu1 %v3192_v23 }
 0x1e7   : > { %2976 = vmatprep.subr.bf16.mxu1 %v3195_v24 }
 0x1e8   : > { %2999 = vmatpush3.bf16.msra.mxu0 %v3194_v25 }
 0x1ea   : > { %2977 = vmatpush3.bf16.msra.mxu1 %v3196_v26 }
 0x1eb   : > { %2572 = vmatmul.mubr.bf16.vlgmr.msra.gmra.mxu0 %v2439_v27 }
 0x1ed   : > { %2399 = vmatmul.mubr.bf16.vlgmr.msra.gmra.mxu1 %v2266_v28 }
 0x24b   : > { %v2868_v29 = vpop.f32.mrf.mxu0 }
 0x24d   : > { %v2846_v30 = vpop.f32.mrf.mxu1  ;;  %v2869_v31 = vpop.f32.mrf.mxu0 }
 0x24e   : > { %v2870_v32 = vadd.f32 %v2869_v31, %v2868_v29 }
 0x24f   : > { %v2847_v7 = vpop.f32.mrf.mxu1  ;;  %v2871_v33 = vpop.f32.mrf.mxu0 }
 0x250   : > { %v2848_v34 = vadd.f32 %v2847_v7, %v2846_v30 }
 0x251   : > { %v2849_v8 = vpop.f32.mrf.mxu1  ;;  %v2872_v9 = vpop.f32.mrf.mxu0 }
 0x252   : > { %v1535_v35 = vadd.f32 %v2870_v32, %v2848_v34 }
 0x253   : > { %v2850_v36 = vpop.f32.mrf.mxu1 }
 0x26b   : > { %v2912_v0 = vpop.f32.mrf.mxu0 }
 0x26d   : > { %v2890_v37 = vpop.f32.mrf.mxu1  ;;  %v2913_v38 = vpop.f32.mrf.mxu0 }
 0x26e   : > { %v2914_v56 = vadd.f32 %v2913_v38, %v2912_v0 }
 0x26f   : > { %v2891_v47 = vpop.f32.mrf.mxu1  ;;  %v2915_v39 = vpop.f32.mrf.mxu0 }
 0x270   : > { %v2892_v54 = vadd.f32 %v2891_v47, %v2890_v37 }
 0x271   : > { %v2893_v40 = vpop.f32.mrf.mxu1  ;;  %v2916_v43 = vpop.f32.mrf.mxu0 }
 0x272   : > { %v1714_v55 = vadd.f32 %v2892_v54, %v1535_v35 }
 0x273   : > { %v2894_v41 = vpop.f32.mrf.mxu1 }
 0x274   : > { %v1887_v58 = vadd.f32 %v2914_v56, %v1714_v55 }
 0x28b   : > { %v2956_v44 = vpop.f32.mrf.mxu0 }
 0x28d   : > { %v2934_v46 = vpop.f32.mrf.mxu1  ;;  %v2957_v48 = vpop.f32.mrf.mxu0 }
 0x28e   : > { %v2958_v63 = vadd.f32 %v2957_v48, %v2956_v44 }
 0x28f   : > { %v2935_v49 = vpop.f32.mrf.mxu1  ;;  %v2959_v50 = vpop.f32.mrf.mxu0 }
 0x290   : > { %v2936_v57 = vadd.f32 %v2935_v49, %v2934_v46 }
 0x291   : > { %v2937_v51 = vpop.f32.mrf.mxu1  ;;  %v2960_v52 = vpop.f32.mrf.mxu0 }
 0x292   : > { %v2060_v60 = vadd.f32 %v2936_v57, %v1887_v58 }
 0x293   : > { %v2938_v53 = vpop.f32.mrf.mxu1 }
 0x294   : > { %v2233_v3 = vadd.f32 %v2958_v63, %v2060_v60 }
 0x2ab   : > { %v3000_v59 = vpop.f32.mrf.mxu0 }
 0x2ad   : > { %v2978_v61 = vpop.f32.mrf.mxu1  ;;  %v3001_v62 = vpop.f32.mrf.mxu0 }
 0x2ae   : > { %v3002_v6 = vadd.f32 %v3001_v62, %v3000_v59 }
 0x2af   : > { %v2979_v1 = vpop.f32.mrf.mxu1  ;;  %v3003_v2 = vpop.f32.mrf.mxu0 }
 0x2b0   : > { %v2980_v45 = vadd.f32 %v2979_v1, %v2978_v61 }
 0x2b1   : > { %v2981_v4 = vpop.f32.mrf.mxu1  ;;  %v3004_v5 = vpop.f32.mrf.mxu0 }
 0x2b2   : > { %v2406_v10 = vadd.f32 %v2980_v45, %v2233_v3 }
 0x2b3   : > { %v2982_v11 = vpop.f32.mrf.mxu1 }
 0x2b4   : > { %v2579_v12 = vadd.f32 %v3002_v6, %v2406_v10 }
 0x2b6   : > { %v2581_v14 = vadd.f32 %v2580_v42, %v2579_v12 }
 0x2b8   : > { %v2583_v15 = vmul.f32 %v2582_v13, %v2581_v14 }
 0x2ba   : > { %2584 = vst [vmem:[%s285_s22] sm:$0x1] %v2583_v15 }
 0x2bb   : > { %3236 = shalt.err (!%p3233_p0)
}
 0x2bc   : > { %s3237_s18 = scalar_lea.hbm %s2596_s9, 16  ;;  %s3241_s20 = scalar_lea.hbm %s3628_s7, 32 }
 0x2bd   : > { %p3238_p1 = scmp.ne.s32.totalorder %s2596_s9, %s3237_s18  ;;  %p3242_p4 = scmp.lt.s32.totalorder %s2596_s9, %s3628_s7 }
 0x2be   : > { %p3243_p7 = scmp.lt.s32.totalorder %s3241_s20, %s3237_s18 }
 0x2bf   : > { %p3239_p2 = pnand %p3238_p1, %p3381_p5 }
 0x2c0   : > { %p3244_p8 = por %p3243_p7, %p3242_p4 }
 0x2c1   : > { %p3240_p3 = pneg %p3239_p2 }
 0x2c3   : > { %p3245_p6 = pnand %p3244_p8, %p3240_p3 }
 0x2c5   : > { %3248 = shalt.err (!%p3245_p6)
}
 0x2c6   : > { %3010 = dma.vmem_to_hbm [thread:$0]  (%p3381_p5), %s2599_s23, 16, %s2596_s9, %s2586_s13  }
 0x2c7 PF: > { %p3022_p9 = scmp.ge.s32.totalorder %s3287_s27, 2  ;;  %s2610_s29 = sand.u32 1, %s3275_s24  }
 0x2c8   : > { %p3632_p10 = scmp.ne.s32.totalorder %s3630_s12, 0  ;;  %s2611_s8 = scalar_lea.sflag [#allocation4], %s2610_s29 }
 0x2ca   : > { %p3017_p11 = pnand %p3022_p9, %p3632_p10 }
 0x2cc   : > { %p3018_p12 = pneg %p3017_p11 }
 0x2ce   : > { %3270 = dma.done.wait (%p3018_p12), %s2611_s8, 16  }
 0x2cf   : > { %3272 = vsyncadd (%p3018_p12), %s2611_s8, 4294967280  ;;  %p18_p13 = scmp.ge.s32.totalorder %s3368_s30, 4   ;;  %s3633_s24 = smov %s3279_s25 }
 0x2d0   : > { %s3634_s25 = smov %s3283_s26  ;;  %s3635_s26 = smov %s3379_s10 }
 0x2d1   : > { %s3636_s27 = smov %s3368_s30  ;;  %20 = sbr.rel (!%p18_p13) target bundleno = 4 (0x4), region = 104 }
 0x2d6   :  { %2615 = vsyncpa [#allocation3], 1 }
 0x2d7   :  { %2617 = vsyncpa [#allocation3 + $0x1], 1 }
 0x2d8   :  { %2618 = vsyncpa [#allocation4], 1 }
 0x2d9   :  { %2620 = vsyncpa [#allocation4 + $0x1], 1 }

</bundles_post_ra>
